<compile_context>
chip_gen: v6e
topology: v6e:2x2x1
jax: 0.10.0
libtpu: 0.0.40
codegen_flags: <defaults>
</compile_context>

<pallas_src>
import math

import jax
import jax.numpy as jnp
from jax import lax
from jax.experimental import pallas as pl
from jax.experimental.pallas import tpu as pltpu


# ------------------------------ small helpers -------------------------------

def _round_up(x, m):
    return ((x + m - 1) // m) * m


def _maybe_pad(a, target_shape):
    if tuple(a.shape) == tuple(target_shape):
        return a
    return jnp.pad(a, [(0, t - s) for s, t in zip(a.shape, target_shape)])


def _pick_time_chunk(t, bc, f_pad, h_pad, budget_bytes, cap=128):
    """Pick a time-chunk Tc that divides T (a multiple of 8, or T itself) whose
    dynamic VMEM footprint (double-buffered x slab + 3 chunk scratches) fits the
    budget, preferring the largest such chunk <= `cap` (bounds static unrolling)."""

    def cost(tc):
        return 4 * (2 * bc * tc * f_pad + 3 * tc * bc * h_pad)

    if t <= cap and cost(t) <= budget_bytes:
        return t
    divisors = [tc for tc in range(8, t, 8) if t % tc == 0]
    good = [tc for tc in divisors if tc <= cap and cost(tc) <= budget_bytes]
    if good:
        return max(good)
    ok = [tc for tc in divisors if cost(tc) <= budget_bytes]
    if ok:
        return min(ok)
    # TODO(synk): T with no suitable multiple-of-8 divisor falls back to a single
    #             whole-sequence chunk; masked ragged tail chunks not implemented.
    return t


# ------------------------------ fused kernel --------------------------------

def _make_fused_rnn_clf_kernel(num_layers, unroll):
    """Ref order: x_ref, [wih_t, whh_t, bias]*L, clf_w_t, clf_b, out_ref,
    then scratches: h_carry, pbm_s, proj_s, seq_s."""

    def kernel(x_ref, *refs):
        rnn_refs = refs[: 3 * num_layers]
        clf_w_ref = refs[3 * num_layers]
        clf_b_ref = refs[3 * num_layers + 1]
        out_ref = refs[3 * num_layers + 2]
        h_carry, pbm_s, proj_s, seq_s = refs[3 * num_layers + 3:]

        bc, tc, fp = x_ref.shape
        hp = proj_s.shape[-1]
        c = pl.program_id(1)                      # time-chunk index ("arbitrary")

        @pl.when(c == 0)
        def _init():
            h_carry[...] = jnp.zeros_like(h_carry)

        for layer in range(num_layers):
            wih = rnn_refs[3 * layer][...]
            whh = rnn_refs[3 * layer + 1][...]
            bias = rnn_refs[3 * layer + 2][...]   # (1, Hp)

            if layer == 0:
                # Hoisted input projection: one big MXU matmul for the whole chunk.
                pbm_s[...] = jnp.dot(
                    x_ref[...].reshape(bc * tc, fp), wih,
                    preferred_element_type=jnp.float32,
                ).reshape(bc, tc, hp)
                # Fold the batch-first -> time-major reorder into the kernel
                # (static sublane copies; removes any wrapper-side HBM transpose of x).
                for tt in range(tc):
                    proj_s[tt] = pbm_s[:, tt, :] + bias
            else:
                proj_s[...] = jnp.dot(
                    seq_s[...].reshape(tc * bc, hp), wih,
                    preferred_element_type=jnp.float32,
                ).reshape(tc, bc, hp) + bias

            # Only h_T of the last layer feeds the classifier: skip its per-step writes.
            write_seq = (layer + 1) < num_layers

            def step(tt, carry, layer=layer, whh=whh, write_seq=write_seq):
                h_prev = h_carry[layer]           # (Bc, Hp)
                h_new = jnp.tanh(
                    proj_s[tt]
                    + jnp.dot(h_prev, whh, preferred_element_type=jnp.float32))
                h_carry[layer] = h_new
                if write_seq:
                    seq_s[tt] = h_new
                return carry

            lax.fori_loop(0, tc, step, 0, unroll=unroll)

        # Fused classifier head on the final hidden state of the last layer.
        @pl.when(c == pl.num_programs(1) - 1)
        def _final():
            h_last = h_carry[num_layers - 1]      # (Bc, Hp)
            out_ref[...] = (
                jnp.dot(h_last, clf_w_ref[...], preferred_element_type=jnp.float32)
                + clf_b_ref[...]
            ).astype(out_ref.dtype)

    return kernel


# --------------------------------- wrapper -----------------------------------

def speech_decoding_forward(x, params, *, chunk_vmem_budget=16 << 20):
    """x: (B, T, feat) batch-first, like the PyTorch module. Returns (B, num_classes)."""
    # TODO(synk): nn.RNN inter-layer dropout is train-mode-only (stochastic);
    #             eval-mode (identity) semantics are implemented here.
    B, T, F = x.shape
    num_layers = len(params["rnn"])
    C = params["clf_w_t"].shape[1]
    H = params["clf_w_t"].shape[0]

    # Pad to lane/sublane-dense tiles (exact: all padded weights/biases are zero;
    # a no-op when shapes are already (8,128)-aligned).
    Bp = _round_up(B, 8)
    Fp = _round_up(F, 128)
    Hp = _round_up(H, 128)
    Cp = _round_up(C, 128)

    x_p = _maybe_pad(x.astype(jnp.float32), (Bp, T, Fp))

    flat_w = []
    for layer, (wih_t, whh_t, bias) in enumerate(params["rnn"]):
        in_pad = Fp if layer == 0 else Hp
        flat_w.append(_maybe_pad(wih_t.astype(jnp.float32), (in_pad, Hp)))
        flat_w.append(_maybe_pad(whh_t.astype(jnp.float32), (Hp, Hp)))
        flat_w.append(_maybe_pad(bias.astype(jnp.float32), (1, Hp)))
    clf_w_p = _maybe_pad(params["clf_w_t"].astype(jnp.float32), (Hp, Cp))
    clf_b_p = _maybe_pad(params["clf_b"].astype(jnp.float32), (1, Cp))

    # Batch chunks: >=2 chunks lets the "parallel" axis feed both v7x TensorCores.
    if Bp >= 16 and Bp % 16 == 0:
        Bc = Bp // 2
    else:
        Bc = Bp
    n_b = Bp // Bc

    Tc = _pick_time_chunk(T, Bc, Fp, Hp, chunk_vmem_budget)
    n_c = T // Tc
    unroll = True if Tc <= 16 else 8

    kernel = _make_fused_rnn_clf_kernel(num_layers, unroll)

    in_specs = [pl.BlockSpec((Bc, Tc, Fp), lambda b, c: (b, c, 0))]
    for w in flat_w + [clf_w_p, clf_b_p]:
        in_specs.append(pl.BlockSpec(w.shape, lambda b, c: (0, 0)))   # resident weights
    out_spec = pl.BlockSpec((Bc, Cp), lambda b, c: (b, 0))

    scratch_shapes = [
        pltpu.VMEM((num_layers, Bc, Hp), jnp.float32),  # per-layer carried hidden state
        pltpu.VMEM((Bc, Tc, Hp), jnp.float32),          # batch-major layer-0 projection
        pltpu.VMEM((Tc, Bc, Hp), jnp.float32),          # time-major projected input
        pltpu.VMEM((Tc, Bc, Hp), jnp.float32),          # time-major inter-layer sequence
    ]

    # Explicit VMEM budget sized from the tiles (double-buffered blocks + weights + scratch).
    weight_bytes = 4 * sum(int(w.size) for w in flat_w + [clf_w_p, clf_b_p])
    block_bytes = 4 * (2 * Bc * Tc * Fp + 2 * Bc * Cp)
    scratch_bytes = 4 * (num_layers * Bc * Hp + Bc * Tc * Hp + 2 * Tc * Bc * Hp)
    needed = 2 * weight_bytes + block_bytes + scratch_bytes
    vmem_limit = int(min(64 << 20, max(needed + (2 << 20), 32 << 20)))

    flops = 2 * T * Bp * Fp * Hp + 2 * T * Bp * Hp * Hp           # layer 0
    flops += (num_layers - 1) * 4 * T * Bp * Hp * Hp              # layers 1..L-1
    flops += 2 * Bp * Hp * Cp                                     # classifier
    cost = pl.CostEstimate(
        flops=int(flops),
        transcendentals=int(num_layers * T * Bp * Hp),
        bytes_accessed=int(4 * x_p.size + weight_bytes + 4 * Bp * Cp),
    )

    out_padded = pl.pallas_call(
        kernel,
        out_shape=jax.ShapeDtypeStruct((Bp, Cp), jnp.float32),
        grid_spec=pltpu.PrefetchScalarGridSpec(
            num_scalar_prefetch=0,
            grid=(n_b, n_c),
            in_specs=in_specs,
            out_specs=out_spec,
            scratch_shapes=scratch_shapes,
        ),
        compiler_params=pltpu.CompilerParams(
            dimension_semantics=("parallel", "arbitrary"),
            vmem_limit_bytes=vmem_limit,
        ),
        cost_estimate=cost,
    )(x_p, *flat_w, clf_w_p, clf_b_p)

    return out_padded[:B, :C]


# ----------------------- deterministic parameter init -----------------------

def init_params(key, feat_size, hidden_size, num_layers, num_classes):
    """PyTorch nn.RNN / nn.Linear shapes; U(-1/sqrt(H), 1/sqrt(H)). Weights are
    pre-transposed for right-multiplication; the two RNN biases are folded."""
    k = 1.0 / math.sqrt(hidden_size)
    rnn = []
    for layer in range(num_layers):
        in_dim = feat_size if layer == 0 else hidden_size
        key, k1, k2, k3, k4 = jax.random.split(key, 5)
        w_ih = jax.random.uniform(k1, (hidden_size, in_dim), jnp.float32, -k, k)
        w_hh = jax.random.uniform(k2, (hidden_size, hidden_size), jnp.float32, -k, k)
        b_ih = jax.random.uniform(k3, (hidden_size,), jnp.float32, -k, k)
        b_hh = jax.random.uniform(k4, (hidden_size,), jnp.float32, -k, k)
        rnn.append((w_ih.T, w_hh.T, (b_ih + b_hh).reshape(1, hidden_size)))
    key, k5, k6 = jax.random.split(key, 3)
    w_clf = jax.random.uniform(k5, (num_classes, hidden_size), jnp.float32, -k, k)
    b_clf = jax.random.uniform(k6, (num_classes,), jnp.float32, -k, k)
    return {"rnn": rnn, "clf_w_t": w_clf.T, "clf_b": b_clf.reshape(1, num_classes)}


# ----------------------------- pure-JAX reference ----------------------------

def reference_forward(x, params):
    seq = jnp.transpose(x, (1, 0, 2)).astype(jnp.float32)  # (T, B, F)
    for (wih_t, whh_t, bias) in params["rnn"]:
        h0 = jnp.zeros((seq.shape[1], whh_t.shape[0]), jnp.float32)

        def step(h, x_t, wih_t=wih_t, whh_t=whh_t, bias=bias):
            h_new = jnp.tanh(x_t @ wih_t + h @ whh_t + bias)
            return h_new, h_new

        _, seq = lax.scan(step, h0, seq)
    return seq[-1] @ params["clf_w_t"] + params["clf_b"]


# ---------------------------------- main -------------------------------------

if __name__ == "__main__":
    B, T, FEAT, HIDDEN, LAYERS, CLASSES = 2, 8, 16, 32, 2, 8

    key = jax.random.PRNGKey(0)
    key_x, key_p = jax.random.split(key)
    x = jax.random.normal(key_x, (B, T, FEAT), jnp.float32)
    params = init_params(key_p, FEAT, HIDDEN, LAYERS, CLASSES)

    fwd = jax.jit(speech_decoding_forward)
    out = fwd(x, params)
    jax.block_until_ready(out)

    ref = reference_forward(x, params)
    assert out.shape == (B, CLASSES), out.shape
    max_err = float(jnp.max(jnp.abs(out - ref)))
    assert jnp.allclose(out, ref, atol=2e-5, rtol=2e-5), f"mismatch: max abs diff {max_err}"
    print("KERNEL_OK")
</pallas_src>

<mosaic_0001>
module attributes {stable_mosaic.version = 11 : i64} {
  func.func @kernel(%arg0: i32, %arg1: i32, %arg2: memref<8x8x128xf32, #tpu.memory_space<vmem>>, %arg3: memref<128x128xf32, #tpu.memory_space<vmem>>, %arg4: memref<128x128xf32, #tpu.memory_space<vmem>>, %arg5: memref<1x128xf32, #tpu.memory_space<vmem>>, %arg6: memref<128x128xf32, #tpu.memory_space<vmem>>, %arg7: memref<128x128xf32, #tpu.memory_space<vmem>>, %arg8: memref<1x128xf32, #tpu.memory_space<vmem>>, %arg9: memref<128x128xf32, #tpu.memory_space<vmem>>, %arg10: memref<1x128xf32, #tpu.memory_space<vmem>>, %arg11: memref<8x128xf32, #tpu.memory_space<vmem>>, %arg12: memref<2x8x128xf32, #tpu.memory_space<vmem>>, %arg13: memref<8x8x128xf32, #tpu.memory_space<vmem>>, %arg14: memref<8x8x128xf32, #tpu.memory_space<vmem>>, %arg15: memref<8x8x128xf32, #tpu.memory_space<vmem>>) attributes {dimension_semantics = [#tpu.dimension_semantics<parallel>, #tpu.dimension_semantics<arbitrary>], iteration_bounds = array<i64: 1, 1>, scalar_prefetch = 0 : i64, scratch_operands = 4 : i64, tpu.core_type = #tpu.core_type<tc>, window_params = [{transform_indices = @transform_0, window_bounds = array<i64: 8, 8, 128>}, {pipeline_mode = #tpu.pipeline_mode<synchronous>, transform_indices = @transform_1, window_bounds = array<i64: 128, 128>}, {pipeline_mode = #tpu.pipeline_mode<synchronous>, transform_indices = @transform_2, window_bounds = array<i64: 128, 128>}, {pipeline_mode = #tpu.pipeline_mode<synchronous>, transform_indices = @transform_3, window_bounds = array<i64: 1, 128>}, {pipeline_mode = #tpu.pipeline_mode<synchronous>, transform_indices = @transform_4, window_bounds = array<i64: 128, 128>}, {pipeline_mode = #tpu.pipeline_mode<synchronous>, transform_indices = @transform_5, window_bounds = array<i64: 128, 128>}, {pipeline_mode = #tpu.pipeline_mode<synchronous>, transform_indices = @transform_6, window_bounds = array<i64: 1, 128>}, {pipeline_mode = #tpu.pipeline_mode<synchronous>, transform_indices = @transform_7, window_bounds = array<i64: 128, 128>}, {pipeline_mode = #tpu.pipeline_mode<synchronous>, transform_indices = @transform_8, window_bounds = array<i64: 1, 128>}, {transform_indices = @transform_9, window_bounds = array<i64: 8, 128>}]} {
    %c0_i32 = arith.constant 0 : i32
    %0 = arith.cmpi eq, %arg1, %c0_i32 : i32
    %1 = arith.extui %0 : i1 to i32
    %c0_i32_0 = arith.constant 0 : i32
    %2 = arith.cmpi ne, %1, %c0_i32_0 : i32
    scf.if %2 {
      %cst_238 = arith.constant 0.000000e+00 : f32
      %289 = vector.broadcast %cst_238 : f32 to vector<2x8x128xf32>
      %c0_239 = arith.constant 0 : index
      %c0_240 = arith.constant 0 : index
      %c0_241 = arith.constant 0 : index
      %290 = vector.load %arg12[%c0_239, %c0_240, %c0_241] : memref<2x8x128xf32, #tpu.memory_space<vmem>>, vector<2x8x128xf32>
      tpu.vector_store %arg12[%c0_239, %c0_240, %c0_241], %289 {strides = array<i32>} : memref<2x8x128xf32, #tpu.memory_space<vmem>>, vector<2x8x128xf32>,
    } else {
    }
    %c0 = arith.constant 0 : index
    %c0_1 = arith.constant 0 : index
    %3 = vector.load %arg3[%c0, %c0_1] : memref<128x128xf32, #tpu.memory_space<vmem>>, vector<128x128xf32>
    %c0_2 = arith.constant 0 : index
    %c0_3 = arith.constant 0 : index
    %4 = vector.load %arg4[%c0_2, %c0_3] : memref<128x128xf32, #tpu.memory_space<vmem>>, vector<128x128xf32>
    %c0_4 = arith.constant 0 : index
    %c0_5 = arith.constant 0 : index
    %5 = vector.load %arg5[%c0_4, %c0_5] : memref<1x128xf32, #tpu.memory_space<vmem>>, vector<1x128xf32>
    %c0_6 = arith.constant 0 : index
    %c0_7 = arith.constant 0 : index
    %c0_8 = arith.constant 0 : index
    %6 = vector.load %arg2[%c0_6, %c0_7, %c0_8] : memref<8x8x128xf32, #tpu.memory_space<vmem>>, vector<8x8x128xf32>
    %7 = vector.shape_cast %6 : vector<8x8x128xf32> to vector<64x128xf32>
    %cst = arith.constant dense<0.000000e+00> : vector<64x128xf32>
    %8 = tpu.matmul %7, %3, %cst {dimension_numbers = #tpu.dot_dimension_numbers<[1], [0], [0], [1], [0, 0, 1, 1], [], []>} : vector<64x128xf32>, vector<128x128xf32>, vector<64x128xf32> -> vector<64x128xf32>
    %9 = vector.shape_cast %8 : vector<64x128xf32> to vector<8x8x128xf32>
    %c0_9 = arith.constant 0 : index
    %c0_10 = arith.constant 0 : index
    %c0_11 = arith.constant 0 : index
    %10 = vector.load %arg13[%c0_9, %c0_10, %c0_11] : memref<8x8x128xf32, #tpu.memory_space<vmem>>, vector<8x8x128xf32>
    tpu.vector_store %arg13[%c0_9, %c0_10, %c0_11], %9 {strides = array<i32>} : memref<8x8x128xf32, #tpu.memory_space<vmem>>, vector<8x8x128xf32>,
    %c0_12 = arith.constant 0 : index
    %c0_13 = arith.constant 0 : index
    %c0_14 = arith.constant 0 : index
    %11 = vector.load %arg13[%c0_12, %c0_13, %c0_14] : memref<8x8x128xf32, #tpu.memory_space<vmem>>, vector<8x1x128xf32>
    %12 = vector.shape_cast %11 : vector<8x1x128xf32> to vector<8x128xf32>
    %13 = vector.broadcast %5 : vector<1x128xf32> to vector<8x128xf32>
    %14 = arith.addf %12, %13 : vector<8x128xf32>
    %c0_15 = arith.constant 0 : index
    %c0_16 = arith.constant 0 : index
    %c0_17 = arith.constant 0 : index
    %15 = vector.load %arg14[%c0_15, %c0_16, %c0_17] : memref<8x8x128xf32, #tpu.memory_space<vmem>>, vector<1x8x128xf32>
    %16 = vector.shape_cast %15 : vector<1x8x128xf32> to vector<8x128xf32>
    %17 = vector.shape_cast %14 : vector<8x128xf32> to vector<1x8x128xf32>
    tpu.vector_store %arg14[%c0_15, %c0_16, %c0_17], %17 {strides = array<i32>} : memref<8x8x128xf32, #tpu.memory_space<vmem>>, vector<1x8x128xf32>,
    %c0_18 = arith.constant 0 : index
    %c1 = arith.constant 1 : index
    %c0_19 = arith.constant 0 : index
    %18 = vector.load %arg13[%c0_18, %c1, %c0_19] : memref<8x8x128xf32, #tpu.memory_space<vmem>>, vector<8x1x128xf32>
    %19 = vector.shape_cast %18 : vector<8x1x128xf32> to vector<8x128xf32>
    %20 = vector.broadcast %5 : vector<1x128xf32> to vector<8x128xf32>
    %21 = arith.addf %19, %20 : vector<8x128xf32>
    %c1_20 = arith.constant 1 : index
    %c0_21 = arith.constant 0 : index
    %c0_22 = arith.constant 0 : index
    %22 = vector.load %arg14[%c1_20, %c0_21, %c0_22] : memref<8x8x128xf32, #tpu.memory_space<vmem>>, vector<1x8x128xf32>
    %23 = vector.shape_cast %22 : vector<1x8x128xf32> to vector<8x128xf32>
    %24 = vector.shape_cast %21 : vector<8x128xf32> to vector<1x8x128xf32>
    tpu.vector_store %arg14[%c1_20, %c0_21, %c0_22], %24 {strides = array<i32>} : memref<8x8x128xf32, #tpu.memory_space<vmem>>, vector<1x8x128xf32>,
    %c0_23 = arith.constant 0 : index
    %c2 = arith.constant 2 : index
    %c0_24 = arith.constant 0 : index
    %25 = vector.load %arg13[%c0_23, %c2, %c0_24] : memref<8x8x128xf32, #tpu.memory_space<vmem>>, vector<8x1x128xf32>
    %26 = vector.shape_cast %25 : vector<8x1x128xf32> to vector<8x128xf32>
    %27 = vector.broadcast %5 : vector<1x128xf32> to vector<8x128xf32>
    %28 = arith.addf %26, %27 : vector<8x128xf32>
    %c2_25 = arith.constant 2 : index
    %c0_26 = arith.constant 0 : index
    %c0_27 = arith.constant 0 : index
    %29 = vector.load %arg14[%c2_25, %c0_26, %c0_27] : memref<8x8x128xf32, #tpu.memory_space<vmem>>, vector<1x8x128xf32>
    %30 = vector.shape_cast %29 : vector<1x8x128xf32> to vector<8x128xf32>
    %31 = vector.shape_cast %28 : vector<8x128xf32> to vector<1x8x128xf32>
    tpu.vector_store %arg14[%c2_25, %c0_26, %c0_27], %31 {strides = array<i32>} : memref<8x8x128xf32, #tpu.memory_space<vmem>>, vector<1x8x128xf32>,
    %c0_28 = arith.constant 0 : index
    %c3 = arith.constant 3 : index
    %c0_29 = arith.constant 0 : index
    %32 = vector.load %arg13[%c0_28, %c3, %c0_29] : memref<8x8x128xf32, #tpu.memory_space<vmem>>, vector<8x1x128xf32>
    %33 = vector.shape_cast %32 : vector<8x1x128xf32> to vector<8x128xf32>
    %34 = vector.broadcast %5 : vector<1x128xf32> to vector<8x128xf32>
    %35 = arith.addf %33, %34 : vector<8x128xf32>
    %c3_30 = arith.constant 3 : index
    %c0_31 = arith.constant 0 : index
    %c0_32 = arith.constant 0 : index
    %36 = vector.load %arg14[%c3_30, %c0_31, %c0_32] : memref<8x8x128xf32, #tpu.memory_space<vmem>>, vector<1x8x128xf32>
    %37 = vector.shape_cast %36 : vector<1x8x128xf32> to vector<8x128xf32>
    %38 = vector.shape_cast %35 : vector<8x128xf32> to vector<1x8x128xf32>
    tpu.vector_store %arg14[%c3_30, %c0_31, %c0_32], %38 {strides = array<i32>} : memref<8x8x128xf32, #tpu.memory_space<vmem>>, vector<1x8x128xf32>,
    %c0_33 = arith.constant 0 : index
    %c4 = arith.constant 4 : index
    %c0_34 = arith.constant 0 : index
    %39 = vector.load %arg13[%c0_33, %c4, %c0_34] : memref<8x8x128xf32, #tpu.memory_space<vmem>>, vector<8x1x128xf32>
    %40 = vector.shape_cast %39 : vector<8x1x128xf32> to vector<8x128xf32>
    %41 = vector.broadcast %5 : vector<1x128xf32> to vector<8x128xf32>
    %42 = arith.addf %40, %41 : vector<8x128xf32>
    %c4_35 = arith.constant 4 : index
    %c0_36 = arith.constant 0 : index
    %c0_37 = arith.constant 0 : index
    %43 = vector.load %arg14[%c4_35, %c0_36, %c0_37] : memref<8x8x128xf32, #tpu.memory_space<vmem>>, vector<1x8x128xf32>
    %44 = vector.shape_cast %43 : vector<1x8x128xf32> to vector<8x128xf32>
    %45 = vector.shape_cast %42 : vector<8x128xf32> to vector<1x8x128xf32>
    tpu.vector_store %arg14[%c4_35, %c0_36, %c0_37], %45 {strides = array<i32>} : memref<8x8x128xf32, #tpu.memory_space<vmem>>, vector<1x8x128xf32>,
    %c0_38 = arith.constant 0 : index
    %c5 = arith.constant 5 : index
    %c0_39 = arith.constant 0 : index
    %46 = vector.load %arg13[%c0_38, %c5, %c0_39] : memref<8x8x128xf32, #tpu.memory_space<vmem>>, vector<8x1x128xf32>
    %47 = vector.shape_cast %46 : vector<8x1x128xf32> to vector<8x128xf32>
    %48 = vector.broadcast %5 : vector<1x128xf32> to vector<8x128xf32>
    %49 = arith.addf %47, %48 : vector<8x128xf32>
    %c5_40 = arith.constant 5 : index
    %c0_41 = arith.constant 0 : index
    %c0_42 = arith.constant 0 : index
    %50 = vector.load %arg14[%c5_40, %c0_41, %c0_42] : memref<8x8x128xf32, #tpu.memory_space<vmem>>, vector<1x8x128xf32>
    %51 = vector.shape_cast %50 : vector<1x8x128xf32> to vector<8x128xf32>
    %52 = vector.shape_cast %49 : vector<8x128xf32> to vector<1x8x128xf32>
    tpu.vector_store %arg14[%c5_40, %c0_41, %c0_42], %52 {strides = array<i32>} : memref<8x8x128xf32, #tpu.memory_space<vmem>>, vector<1x8x128xf32>,
    %c0_43 = arith.constant 0 : index
    %c6 = arith.constant 6 : index
    %c0_44 = arith.constant 0 : index
    %53 = vector.load %arg13[%c0_43, %c6, %c0_44] : memref<8x8x128xf32, #tpu.memory_space<vmem>>, vector<8x1x128xf32>
    %54 = vector.shape_cast %53 : vector<8x1x128xf32> to vector<8x128xf32>
    %55 = vector.broadcast %5 : vector<1x128xf32> to vector<8x128xf32>
    %56 = arith.addf %54, %55 : vector<8x128xf32>
    %c6_45 = arith.constant 6 : index
    %c0_46 = arith.constant 0 : index
    %c0_47 = arith.constant 0 : index
    %57 = vector.load %arg14[%c6_45, %c0_46, %c0_47] : memref<8x8x128xf32, #tpu.memory_space<vmem>>, vector<1x8x128xf32>
    %58 = vector.shape_cast %57 : vector<1x8x128xf32> to vector<8x128xf32>
    %59 = vector.shape_cast %56 : vector<8x128xf32> to vector<1x8x128xf32>
    tpu.vector_store %arg14[%c6_45, %c0_46, %c0_47], %59 {strides = array<i32>} : memref<8x8x128xf32, #tpu.memory_space<vmem>>, vector<1x8x128xf32>,
    %c0_48 = arith.constant 0 : index
    %c7 = arith.constant 7 : index
    %c0_49 = arith.constant 0 : index
    %60 = vector.load %arg13[%c0_48, %c7, %c0_49] : memref<8x8x128xf32, #tpu.memory_space<vmem>>, vector<8x1x128xf32>
    %61 = vector.shape_cast %60 : vector<8x1x128xf32> to vector<8x128xf32>
    %62 = vector.broadcast %5 : vector<1x128xf32> to vector<8x128xf32>
    %63 = arith.addf %61, %62 : vector<8x128xf32>
    %c7_50 = arith.constant 7 : index
    %c0_51 = arith.constant 0 : index
    %c0_52 = arith.constant 0 : index
    %64 = vector.load %arg14[%c7_50, %c0_51, %c0_52] : memref<8x8x128xf32, #tpu.memory_space<vmem>>, vector<1x8x128xf32>
    %65 = vector.shape_cast %64 : vector<1x8x128xf32> to vector<8x128xf32>
    %66 = vector.shape_cast %63 : vector<8x128xf32> to vector<1x8x128xf32>
    tpu.vector_store %arg14[%c7_50, %c0_51, %c0_52], %66 {strides = array<i32>} : memref<8x8x128xf32, #tpu.memory_space<vmem>>, vector<1x8x128xf32>,
    %c0_i32_53 = arith.constant 0 : i32
    %c0_54 = arith.constant 0 : index
    %c0_55 = arith.constant 0 : index
    %c0_56 = arith.constant 0 : index
    %67 = vector.load %arg12[%c0_54, %c0_55, %c0_56] : memref<2x8x128xf32, #tpu.memory_space<vmem>>, vector<1x8x128xf32>
    %68 = vector.shape_cast %67 : vector<1x8x128xf32> to vector<8x128xf32>
    %69 = arith.index_cast %c0_i32_53 : i32 to index
    %c0_57 = arith.constant 0 : index
    %c0_58 = arith.constant 0 : index
    %70 = vector.load %arg14[%69, %c0_57, %c0_58] : memref<8x8x128xf32, #tpu.memory_space<vmem>>, vector<1x8x128xf32>
    %71 = vector.shape_cast %70 : vector<1x8x128xf32> to vector<8x128xf32>
    %cst_59 = arith.constant dense<0.000000e+00> : vector<8x128xf32>
    %72 = tpu.matmul %68, %4, %cst_59 {dimension_numbers = #tpu.dot_dimension_numbers<[1], [0], [0], [1], [0, 0, 1, 1], [], []>} : vector<8x128xf32>, vector<128x128xf32>, vector<8x128xf32> -> vector<8x128xf32>
    %73 = arith.addf %71, %72 : vector<8x128xf32>
    %74 = math.tanh %73 : vector<8x128xf32>
    %c0_60 = arith.constant 0 : index
    %c0_61 = arith.constant 0 : index
    %c0_62 = arith.constant 0 : index
    %75 = vector.load %arg12[%c0_60, %c0_61, %c0_62] : memref<2x8x128xf32, #tpu.memory_space<vmem>>, vector<1x8x128xf32>
    %76 = vector.shape_cast %75 : vector<1x8x128xf32> to vector<8x128xf32>
    %77 = vector.shape_cast %74 : vector<8x128xf32> to vector<1x8x128xf32>
    tpu.vector_store %arg12[%c0_60, %c0_61, %c0_62], %77 {strides = array<i32>} : memref<2x8x128xf32, #tpu.memory_space<vmem>>, vector<1x8x128xf32>,
    %78 = arith.index_cast %c0_i32_53 : i32 to index
    %c0_63 = arith.constant 0 : index
    %c0_64 = arith.constant 0 : index
    %79 = vector.load %arg15[%78, %c0_63, %c0_64] : memref<8x8x128xf32, #tpu.memory_space<vmem>>, vector<1x8x128xf32>
    %80 = vector.shape_cast %79 : vector<1x8x128xf32> to vector<8x128xf32>
    %81 = vector.shape_cast %74 : vector<8x128xf32> to vector<1x8x128xf32>
    tpu.vector_store %arg15[%78, %c0_63, %c0_64], %81 {strides = array<i32>} : memref<8x8x128xf32, #tpu.memory_space<vmem>>, vector<1x8x128xf32>,
    %c1_i32 = arith.constant 1 : i32
    %c0_65 = arith.constant 0 : index
    %c0_66 = arith.constant 0 : index
    %c0_67 = arith.constant 0 : index
    %82 = vector.load %arg12[%c0_65, %c0_66, %c0_67] : memref<2x8x128xf32, #tpu.memory_space<vmem>>, vector<1x8x128xf32>
    %83 = vector.shape_cast %82 : vector<1x8x128xf32> to vector<8x128xf32>
    %84 = arith.index_cast %c1_i32 : i32 to index
    %c0_68 = arith.constant 0 : index
    %c0_69 = arith.constant 0 : index
    %85 = vector.load %arg14[%84, %c0_68, %c0_69] : memref<8x8x128xf32, #tpu.memory_space<vmem>>, vector<1x8x128xf32>
    %86 = vector.shape_cast %85 : vector<1x8x128xf32> to vector<8x128xf32>
    %cst_70 = arith.constant dense<0.000000e+00> : vector<8x128xf32>
    %87 = tpu.matmul %83, %4, %cst_70 {dimension_numbers = #tpu.dot_dimension_numbers<[1], [0], [0], [1], [0, 0, 1, 1], [], []>} : vector<8x128xf32>, vector<128x128xf32>, vector<8x128xf32> -> vector<8x128xf32>
    %88 = arith.addf %86, %87 : vector<8x128xf32>
    %89 = math.tanh %88 : vector<8x128xf32>
    %c0_71 = arith.constant 0 : index
    %c0_72 = arith.constant 0 : index
    %c0_73 = arith.constant 0 : index
    %90 = vector.load %arg12[%c0_71, %c0_72, %c0_73] : memref<2x8x128xf32, #tpu.memory_space<vmem>>, vector<1x8x128xf32>
    %91 = vector.shape_cast %90 : vector<1x8x128xf32> to vector<8x128xf32>
    %92 = vector.shape_cast %89 : vector<8x128xf32> to vector<1x8x128xf32>
    tpu.vector_store %arg12[%c0_71, %c0_72, %c0_73], %92 {strides = array<i32>} : memref<2x8x128xf32, #tpu.memory_space<vmem>>, vector<1x8x128xf32>,
    %93 = arith.index_cast %c1_i32 : i32 to index
    %c0_74 = arith.constant 0 : index
    %c0_75 = arith.constant 0 : index
    %94 = vector.load %arg15[%93, %c0_74, %c0_75] : memref<8x8x128xf32, #tpu.memory_space<vmem>>, vector<1x8x128xf32>
    %95 = vector.shape_cast %94 : vector<1x8x128xf32> to vector<8x128xf32>
    %96 = vector.shape_cast %89 : vector<8x128xf32> to vector<1x8x128xf32>
    tpu.vector_store %arg15[%93, %c0_74, %c0_75], %96 {strides = array<i32>} : memref<8x8x128xf32, #tpu.memory_space<vmem>>, vector<1x8x128xf32>,
    %c2_i32 = arith.constant 2 : i32
    %c0_76 = arith.constant 0 : index
    %c0_77 = arith.constant 0 : index
    %c0_78 = arith.constant 0 : index
    %97 = vector.load %arg12[%c0_76, %c0_77, %c0_78] : memref<2x8x128xf32, #tpu.memory_space<vmem>>, vector<1x8x128xf32>
    %98 = vector.shape_cast %97 : vector<1x8x128xf32> to vector<8x128xf32>
    %99 = arith.index_cast %c2_i32 : i32 to index
    %c0_79 = arith.constant 0 : index
    %c0_80 = arith.constant 0 : index
    %100 = vector.load %arg14[%99, %c0_79, %c0_80] : memref<8x8x128xf32, #tpu.memory_space<vmem>>, vector<1x8x128xf32>
    %101 = vector.shape_cast %100 : vector<1x8x128xf32> to vector<8x128xf32>
    %cst_81 = arith.constant dense<0.000000e+00> : vector<8x128xf32>
    %102 = tpu.matmul %98, %4, %cst_81 {dimension_numbers = #tpu.dot_dimension_numbers<[1], [0], [0], [1], [0, 0, 1, 1], [], []>} : vector<8x128xf32>, vector<128x128xf32>, vector<8x128xf32> -> vector<8x128xf32>
    %103 = arith.addf %101, %102 : vector<8x128xf32>
    %104 = math.tanh %103 : vector<8x128xf32>
    %c0_82 = arith.constant 0 : index
    %c0_83 = arith.constant 0 : index
    %c0_84 = arith.constant 0 : index
    %105 = vector.load %arg12[%c0_82, %c0_83, %c0_84] : memref<2x8x128xf32, #tpu.memory_space<vmem>>, vector<1x8x128xf32>
    %106 = vector.shape_cast %105 : vector<1x8x128xf32> to vector<8x128xf32>
    %107 = vector.shape_cast %104 : vector<8x128xf32> to vector<1x8x128xf32>
    tpu.vector_store %arg12[%c0_82, %c0_83, %c0_84], %107 {strides = array<i32>} : memref<2x8x128xf32, #tpu.memory_space<vmem>>, vector<1x8x128xf32>,
    %108 = arith.index_cast %c2_i32 : i32 to index
    %c0_85 = arith.constant 0 : index
    %c0_86 = arith.constant 0 : index
    %109 = vector.load %arg15[%108, %c0_85, %c0_86] : memref<8x8x128xf32, #tpu.memory_space<vmem>>, vector<1x8x128xf32>
    %110 = vector.shape_cast %109 : vector<1x8x128xf32> to vector<8x128xf32>
    %111 = vector.shape_cast %104 : vector<8x128xf32> to vector<1x8x128xf32>
    tpu.vector_store %arg15[%108, %c0_85, %c0_86], %111 {strides = array<i32>} : memref<8x8x128xf32, #tpu.memory_space<vmem>>, vector<1x8x128xf32>,
    %c3_i32 = arith.constant 3 : i32
    %c0_87 = arith.constant 0 : index
    %c0_88 = arith.constant 0 : index
    %c0_89 = arith.constant 0 : index
    %112 = vector.load %arg12[%c0_87, %c0_88, %c0_89] : memref<2x8x128xf32, #tpu.memory_space<vmem>>, vector<1x8x128xf32>
    %113 = vector.shape_cast %112 : vector<1x8x128xf32> to vector<8x128xf32>
    %114 = arith.index_cast %c3_i32 : i32 to index
    %c0_90 = arith.constant 0 : index
    %c0_91 = arith.constant 0 : index
    %115 = vector.load %arg14[%114, %c0_90, %c0_91] : memref<8x8x128xf32, #tpu.memory_space<vmem>>, vector<1x8x128xf32>
    %116 = vector.shape_cast %115 : vector<1x8x128xf32> to vector<8x128xf32>
    %cst_92 = arith.constant dense<0.000000e+00> : vector<8x128xf32>
    %117 = tpu.matmul %113, %4, %cst_92 {dimension_numbers = #tpu.dot_dimension_numbers<[1], [0], [0], [1], [0, 0, 1, 1], [], []>} : vector<8x128xf32>, vector<128x128xf32>, vector<8x128xf32> -> vector<8x128xf32>
    %118 = arith.addf %116, %117 : vector<8x128xf32>
    %119 = math.tanh %118 : vector<8x128xf32>
    %c0_93 = arith.constant 0 : index
    %c0_94 = arith.constant 0 : index
    %c0_95 = arith.constant 0 : index
    %120 = vector.load %arg12[%c0_93, %c0_94, %c0_95] : memref<2x8x128xf32, #tpu.memory_space<vmem>>, vector<1x8x128xf32>
    %121 = vector.shape_cast %120 : vector<1x8x128xf32> to vector<8x128xf32>
    %122 = vector.shape_cast %119 : vector<8x128xf32> to vector<1x8x128xf32>
    tpu.vector_store %arg12[%c0_93, %c0_94, %c0_95], %122 {strides = array<i32>} : memref<2x8x128xf32, #tpu.memory_space<vmem>>, vector<1x8x128xf32>,
    %123 = arith.index_cast %c3_i32 : i32 to index
    %c0_96 = arith.constant 0 : index
    %c0_97 = arith.constant 0 : index
    %124 = vector.load %arg15[%123, %c0_96, %c0_97] : memref<8x8x128xf32, #tpu.memory_space<vmem>>, vector<1x8x128xf32>
    %125 = vector.shape_cast %124 : vector<1x8x128xf32> to vector<8x128xf32>
    %126 = vector.shape_cast %119 : vector<8x128xf32> to vector<1x8x128xf32>
    tpu.vector_store %arg15[%123, %c0_96, %c0_97], %126 {strides = array<i32>} : memref<8x8x128xf32, #tpu.memory_space<vmem>>, vector<1x8x128xf32>,
    %c4_i32 = arith.constant 4 : i32
    %c0_98 = arith.constant 0 : index
    %c0_99 = arith.constant 0 : index
    %c0_100 = arith.constant 0 : index
    %127 = vector.load %arg12[%c0_98, %c0_99, %c0_100] : memref<2x8x128xf32, #tpu.memory_space<vmem>>, vector<1x8x128xf32>
    %128 = vector.shape_cast %127 : vector<1x8x128xf32> to vector<8x128xf32>
    %129 = arith.index_cast %c4_i32 : i32 to index
    %c0_101 = arith.constant 0 : index
    %c0_102 = arith.constant 0 : index
    %130 = vector.load %arg14[%129, %c0_101, %c0_102] : memref<8x8x128xf32, #tpu.memory_space<vmem>>, vector<1x8x128xf32>
    %131 = vector.shape_cast %130 : vector<1x8x128xf32> to vector<8x128xf32>
    %cst_103 = arith.constant dense<0.000000e+00> : vector<8x128xf32>
    %132 = tpu.matmul %128, %4, %cst_103 {dimension_numbers = #tpu.dot_dimension_numbers<[1], [0], [0], [1], [0, 0, 1, 1], [], []>} : vector<8x128xf32>, vector<128x128xf32>, vector<8x128xf32> -> vector<8x128xf32>
    %133 = arith.addf %131, %132 : vector<8x128xf32>
    %134 = math.tanh %133 : vector<8x128xf32>
    %c0_104 = arith.constant 0 : index
    %c0_105 = arith.constant 0 : index
    %c0_106 = arith.constant 0 : index
    %135 = vector.load %arg12[%c0_104, %c0_105, %c0_106] : memref<2x8x128xf32, #tpu.memory_space<vmem>>, vector<1x8x128xf32>
    %136 = vector.shape_cast %135 : vector<1x8x128xf32> to vector<8x128xf32>
    %137 = vector.shape_cast %134 : vector<8x128xf32> to vector<1x8x128xf32>
    tpu.vector_store %arg12[%c0_104, %c0_105, %c0_106], %137 {strides = array<i32>} : memref<2x8x128xf32, #tpu.memory_space<vmem>>, vector<1x8x128xf32>,
    %138 = arith.index_cast %c4_i32 : i32 to index
    %c0_107 = arith.constant 0 : index
    %c0_108 = arith.constant 0 : index
    %139 = vector.load %arg15[%138, %c0_107, %c0_108] : memref<8x8x128xf32, #tpu.memory_space<vmem>>, vector<1x8x128xf32>
    %140 = vector.shape_cast %139 : vector<1x8x128xf32> to vector<8x128xf32>
    %141 = vector.shape_cast %134 : vector<8x128xf32> to vector<1x8x128xf32>
    tpu.vector_store %arg15[%138, %c0_107, %c0_108], %141 {strides = array<i32>} : memref<8x8x128xf32, #tpu.memory_space<vmem>>, vector<1x8x128xf32>,
    %c5_i32 = arith.constant 5 : i32
    %c0_109 = arith.constant 0 : index
    %c0_110 = arith.constant 0 : index
    %c0_111 = arith.constant 0 : index
    %142 = vector.load %arg12[%c0_109, %c0_110, %c0_111] : memref<2x8x128xf32, #tpu.memory_space<vmem>>, vector<1x8x128xf32>
    %143 = vector.shape_cast %142 : vector<1x8x128xf32> to vector<8x128xf32>
    %144 = arith.index_cast %c5_i32 : i32 to index
    %c0_112 = arith.constant 0 : index
    %c0_113 = arith.constant 0 : index
    %145 = vector.load %arg14[%144, %c0_112, %c0_113] : memref<8x8x128xf32, #tpu.memory_space<vmem>>, vector<1x8x128xf32>
    %146 = vector.shape_cast %145 : vector<1x8x128xf32> to vector<8x128xf32>
    %cst_114 = arith.constant dense<0.000000e+00> : vector<8x128xf32>
    %147 = tpu.matmul %143, %4, %cst_114 {dimension_numbers = #tpu.dot_dimension_numbers<[1], [0], [0], [1], [0, 0, 1, 1], [], []>} : vector<8x128xf32>, vector<128x128xf32>, vector<8x128xf32> -> vector<8x128xf32>
    %148 = arith.addf %146, %147 : vector<8x128xf32>
    %149 = math.tanh %148 : vector<8x128xf32>
    %c0_115 = arith.constant 0 : index
    %c0_116 = arith.constant 0 : index
    %c0_117 = arith.constant 0 : index
    %150 = vector.load %arg12[%c0_115, %c0_116, %c0_117] : memref<2x8x128xf32, #tpu.memory_space<vmem>>, vector<1x8x128xf32>
    %151 = vector.shape_cast %150 : vector<1x8x128xf32> to vector<8x128xf32>
    %152 = vector.shape_cast %149 : vector<8x128xf32> to vector<1x8x128xf32>
    tpu.vector_store %arg12[%c0_115, %c0_116, %c0_117], %152 {strides = array<i32>} : memref<2x8x128xf32, #tpu.memory_space<vmem>>, vector<1x8x128xf32>,
    %153 = arith.index_cast %c5_i32 : i32 to index
    %c0_118 = arith.constant 0 : index
    %c0_119 = arith.constant 0 : index
    %154 = vector.load %arg15[%153, %c0_118, %c0_119] : memref<8x8x128xf32, #tpu.memory_space<vmem>>, vector<1x8x128xf32>
    %155 = vector.shape_cast %154 : vector<1x8x128xf32> to vector<8x128xf32>
    %156 = vector.shape_cast %149 : vector<8x128xf32> to vector<1x8x128xf32>
    tpu.vector_store %arg15[%153, %c0_118, %c0_119], %156 {strides = array<i32>} : memref<8x8x128xf32, #tpu.memory_space<vmem>>, vector<1x8x128xf32>,
    %c6_i32 = arith.constant 6 : i32
    %c0_120 = arith.constant 0 : index
    %c0_121 = arith.constant 0 : index
    %c0_122 = arith.constant 0 : index
    %157 = vector.load %arg12[%c0_120, %c0_121, %c0_122] : memref<2x8x128xf32, #tpu.memory_space<vmem>>, vector<1x8x128xf32>
    %158 = vector.shape_cast %157 : vector<1x8x128xf32> to vector<8x128xf32>
    %159 = arith.index_cast %c6_i32 : i32 to index
    %c0_123 = arith.constant 0 : index
    %c0_124 = arith.constant 0 : index
    %160 = vector.load %arg14[%159, %c0_123, %c0_124] : memref<8x8x128xf32, #tpu.memory_space<vmem>>, vector<1x8x128xf32>
    %161 = vector.shape_cast %160 : vector<1x8x128xf32> to vector<8x128xf32>
    %cst_125 = arith.constant dense<0.000000e+00> : vector<8x128xf32>
    %162 = tpu.matmul %158, %4, %cst_125 {dimension_numbers = #tpu.dot_dimension_numbers<[1], [0], [0], [1], [0, 0, 1, 1], [], []>} : vector<8x128xf32>, vector<128x128xf32>, vector<8x128xf32> -> vector<8x128xf32>
    %163 = arith.addf %161, %162 : vector<8x128xf32>
    %164 = math.tanh %163 : vector<8x128xf32>
    %c0_126 = arith.constant 0 : index
    %c0_127 = arith.constant 0 : index
    %c0_128 = arith.constant 0 : index
    %165 = vector.load %arg12[%c0_126, %c0_127, %c0_128] : memref<2x8x128xf32, #tpu.memory_space<vmem>>, vector<1x8x128xf32>
    %166 = vector.shape_cast %165 : vector<1x8x128xf32> to vector<8x128xf32>
    %167 = vector.shape_cast %164 : vector<8x128xf32> to vector<1x8x128xf32>
    tpu.vector_store %arg12[%c0_126, %c0_127, %c0_128], %167 {strides = array<i32>} : memref<2x8x128xf32, #tpu.memory_space<vmem>>, vector<1x8x128xf32>,
    %168 = arith.index_cast %c6_i32 : i32 to index
    %c0_129 = arith.constant 0 : index
    %c0_130 = arith.constant 0 : index
    %169 = vector.load %arg15[%168, %c0_129, %c0_130] : memref<8x8x128xf32, #tpu.memory_space<vmem>>, vector<1x8x128xf32>
    %170 = vector.shape_cast %169 : vector<1x8x128xf32> to vector<8x128xf32>
    %171 = vector.shape_cast %164 : vector<8x128xf32> to vector<1x8x128xf32>
    tpu.vector_store %arg15[%168, %c0_129, %c0_130], %171 {strides = array<i32>} : memref<8x8x128xf32, #tpu.memory_space<vmem>>, vector<1x8x128xf32>,
    %c7_i32 = arith.constant 7 : i32
    %c0_131 = arith.constant 0 : index
    %c0_132 = arith.constant 0 : index
    %c0_133 = arith.constant 0 : index
    %172 = vector.load %arg12[%c0_131, %c0_132, %c0_133] : memref<2x8x128xf32, #tpu.memory_space<vmem>>, vector<1x8x128xf32>
    %173 = vector.shape_cast %172 : vector<1x8x128xf32> to vector<8x128xf32>
    %174 = arith.index_cast %c7_i32 : i32 to index
    %c0_134 = arith.constant 0 : index
    %c0_135 = arith.constant 0 : index
    %175 = vector.load %arg14[%174, %c0_134, %c0_135] : memref<8x8x128xf32, #tpu.memory_space<vmem>>, vector<1x8x128xf32>
    %176 = vector.shape_cast %175 : vector<1x8x128xf32> to vector<8x128xf32>
    %cst_136 = arith.constant dense<0.000000e+00> : vector<8x128xf32>
    %177 = tpu.matmul %173, %4, %cst_136 {dimension_numbers = #tpu.dot_dimension_numbers<[1], [0], [0], [1], [0, 0, 1, 1], [], []>} : vector<8x128xf32>, vector<128x128xf32>, vector<8x128xf32> -> vector<8x128xf32>
    %178 = arith.addf %176, %177 : vector<8x128xf32>
    %179 = math.tanh %178 : vector<8x128xf32>
    %c0_137 = arith.constant 0 : index
    %c0_138 = arith.constant 0 : index
    %c0_139 = arith.constant 0 : index
    %180 = vector.load %arg12[%c0_137, %c0_138, %c0_139] : memref<2x8x128xf32, #tpu.memory_space<vmem>>, vector<1x8x128xf32>
    %181 = vector.shape_cast %180 : vector<1x8x128xf32> to vector<8x128xf32>
    %182 = vector.shape_cast %179 : vector<8x128xf32> to vector<1x8x128xf32>
    tpu.vector_store %arg12[%c0_137, %c0_138, %c0_139], %182 {strides = array<i32>} : memref<2x8x128xf32, #tpu.memory_space<vmem>>, vector<1x8x128xf32>,
    %183 = arith.index_cast %c7_i32 : i32 to index
    %c0_140 = arith.constant 0 : index
    %c0_141 = arith.constant 0 : index
    %184 = vector.load %arg15[%183, %c0_140, %c0_141] : memref<8x8x128xf32, #tpu.memory_space<vmem>>, vector<1x8x128xf32>
    %185 = vector.shape_cast %184 : vector<1x8x128xf32> to vector<8x128xf32>
    %186 = vector.shape_cast %179 : vector<8x128xf32> to vector<1x8x128xf32>
    tpu.vector_store %arg15[%183, %c0_140, %c0_141], %186 {strides = array<i32>} : memref<8x8x128xf32, #tpu.memory_space<vmem>>, vector<1x8x128xf32>,
    %c8_i32 = arith.constant 8 : i32
    %c0_142 = arith.constant 0 : index
    %c0_143 = arith.constant 0 : index
    %187 = vector.load %arg6[%c0_142, %c0_143] : memref<128x128xf32, #tpu.memory_space<vmem>>, vector<128x128xf32>
    %c0_144 = arith.constant 0 : index
    %c0_145 = arith.constant 0 : index
    %188 = vector.load %arg7[%c0_144, %c0_145] : memref<128x128xf32, #tpu.memory_space<vmem>>, vector<128x128xf32>
    %c0_146 = arith.constant 0 : index
    %c0_147 = arith.constant 0 : index
    %189 = vector.load %arg8[%c0_146, %c0_147] : memref<1x128xf32, #tpu.memory_space<vmem>>, vector<1x128xf32>
    %c0_148 = arith.constant 0 : index
    %c0_149 = arith.constant 0 : index
    %c0_150 = arith.constant 0 : index
    %190 = vector.load %arg15[%c0_148, %c0_149, %c0_150] : memref<8x8x128xf32, #tpu.memory_space<vmem>>, vector<8x8x128xf32>
    %191 = vector.shape_cast %190 : vector<8x8x128xf32> to vector<64x128xf32>
    %cst_151 = arith.constant dense<0.000000e+00> : vector<64x128xf32>
    %192 = tpu.matmul %191, %187, %cst_151 {dimension_numbers = #tpu.dot_dimension_numbers<[1], [0], [0], [1], [0, 0, 1, 1], [], []>} : vector<64x128xf32>, vector<128x128xf32>, vector<64x128xf32> -> vector<64x128xf32>
    %193 = vector.shape_cast %192 : vector<64x128xf32> to vector<8x8x128xf32>
    %194 = vector.shape_cast %189 : vector<1x128xf32> to vector<1x1x128xf32>
    %195 = vector.broadcast %194 : vector<1x1x128xf32> to vector<8x8x128xf32>
    %196 = arith.addf %193, %195 : vector<8x8x128xf32>
    %c0_152 = arith.constant 0 : index
    %c0_153 = arith.constant 0 : index
    %c0_154 = arith.constant 0 : index
    %197 = vector.load %arg14[%c0_152, %c0_153, %c0_154] : memref<8x8x128xf32, #tpu.memory_space<vmem>>, vector<8x8x128xf32>
    tpu.vector_store %arg14[%c0_152, %c0_153, %c0_154], %196 {strides = array<i32>} : memref<8x8x128xf32, #tpu.memory_space<vmem>>, vector<8x8x128xf32>,
    %c0_i32_155 = arith.constant 0 : i32
    %c1_156 = arith.constant 1 : index
    %c0_157 = arith.constant 0 : index
    %c0_158 = arith.constant 0 : index
    %198 = vector.load %arg12[%c1_156, %c0_157, %c0_158] : memref<2x8x128xf32, #tpu.memory_space<vmem>>, vector<1x8x128xf32>
    %199 = vector.shape_cast %198 : vector<1x8x128xf32> to vector<8x128xf32>
    %200 = arith.index_cast %c0_i32_155 : i32 to index
    %c0_159 = arith.constant 0 : index
    %c0_160 = arith.constant 0 : index
    %201 = vector.load %arg14[%200, %c0_159, %c0_160] : memref<8x8x128xf32, #tpu.memory_space<vmem>>, vector<1x8x128xf32>
    %202 = vector.shape_cast %201 : vector<1x8x128xf32> to vector<8x128xf32>
    %cst_161 = arith.constant dense<0.000000e+00> : vector<8x128xf32>
    %203 = tpu.matmul %199, %188, %cst_161 {dimension_numbers = #tpu.dot_dimension_numbers<[1], [0], [0], [1], [0, 0, 1, 1], [], []>} : vector<8x128xf32>, vector<128x128xf32>, vector<8x128xf32> -> vector<8x128xf32>
    %204 = arith.addf %202, %203 : vector<8x128xf32>
    %205 = math.tanh %204 : vector<8x128xf32>
    %c1_162 = arith.constant 1 : index
    %c0_163 = arith.constant 0 : index
    %c0_164 = arith.constant 0 : index
    %206 = vector.load %arg12[%c1_162, %c0_163, %c0_164] : memref<2x8x128xf32, #tpu.memory_space<vmem>>, vector<1x8x128xf32>
    %207 = vector.shape_cast %206 : vector<1x8x128xf32> to vector<8x128xf32>
    %208 = vector.shape_cast %205 : vector<8x128xf32> to vector<1x8x128xf32>
    tpu.vector_store %arg12[%c1_162, %c0_163, %c0_164], %208 {strides = array<i32>} : memref<2x8x128xf32, #tpu.memory_space<vmem>>, vector<1x8x128xf32>,
    %c1_i32_165 = arith.constant 1 : i32
    %c1_166 = arith.constant 1 : index
    %c0_167 = arith.constant 0 : index
    %c0_168 = arith.constant 0 : index
    %209 = vector.load %arg12[%c1_166, %c0_167, %c0_168] : memref<2x8x128xf32, #tpu.memory_space<vmem>>, vector<1x8x128xf32>
    %210 = vector.shape_cast %209 : vector<1x8x128xf32> to vector<8x128xf32>
    %211 = arith.index_cast %c1_i32_165 : i32 to index
    %c0_169 = arith.constant 0 : index
    %c0_170 = arith.constant 0 : index
    %212 = vector.load %arg14[%211, %c0_169, %c0_170] : memref<8x8x128xf32, #tpu.memory_space<vmem>>, vector<1x8x128xf32>
    %213 = vector.shape_cast %212 : vector<1x8x128xf32> to vector<8x128xf32>
    %cst_171 = arith.constant dense<0.000000e+00> : vector<8x128xf32>
    %214 = tpu.matmul %210, %188, %cst_171 {dimension_numbers = #tpu.dot_dimension_numbers<[1], [0], [0], [1], [0, 0, 1, 1], [], []>} : vector<8x128xf32>, vector<128x128xf32>, vector<8x128xf32> -> vector<8x128xf32>
    %215 = arith.addf %213, %214 : vector<8x128xf32>
    %216 = math.tanh %215 : vector<8x128xf32>
    %c1_172 = arith.constant 1 : index
    %c0_173 = arith.constant 0 : index
    %c0_174 = arith.constant 0 : index
    %217 = vector.load %arg12[%c1_172, %c0_173, %c0_174] : memref<2x8x128xf32, #tpu.memory_space<vmem>>, vector<1x8x128xf32>
    %218 = vector.shape_cast %217 : vector<1x8x128xf32> to vector<8x128xf32>
    %219 = vector.shape_cast %216 : vector<8x128xf32> to vector<1x8x128xf32>
    tpu.vector_store %arg12[%c1_172, %c0_173, %c0_174], %219 {strides = array<i32>} : memref<2x8x128xf32, #tpu.memory_space<vmem>>, vector<1x8x128xf32>,
    %c2_i32_175 = arith.constant 2 : i32
    %c1_176 = arith.constant 1 : index
    %c0_177 = arith.constant 0 : index
    %c0_178 = arith.constant 0 : index
    %220 = vector.load %arg12[%c1_176, %c0_177, %c0_178] : memref<2x8x128xf32, #tpu.memory_space<vmem>>, vector<1x8x128xf32>
    %221 = vector.shape_cast %220 : vector<1x8x128xf32> to vector<8x128xf32>
    %222 = arith.index_cast %c2_i32_175 : i32 to index
    %c0_179 = arith.constant 0 : index
    %c0_180 = arith.constant 0 : index
    %223 = vector.load %arg14[%222, %c0_179, %c0_180] : memref<8x8x128xf32, #tpu.memory_space<vmem>>, vector<1x8x128xf32>
    %224 = vector.shape_cast %223 : vector<1x8x128xf32> to vector<8x128xf32>
    %cst_181 = arith.constant dense<0.000000e+00> : vector<8x128xf32>
    %225 = tpu.matmul %221, %188, %cst_181 {dimension_numbers = #tpu.dot_dimension_numbers<[1], [0], [0], [1], [0, 0, 1, 1], [], []>} : vector<8x128xf32>, vector<128x128xf32>, vector<8x128xf32> -> vector<8x128xf32>
    %226 = arith.addf %224, %225 : vector<8x128xf32>
    %227 = math.tanh %226 : vector<8x128xf32>
    %c1_182 = arith.constant 1 : index
    %c0_183 = arith.constant 0 : index
    %c0_184 = arith.constant 0 : index
    %228 = vector.load %arg12[%c1_182, %c0_183, %c0_184] : memref<2x8x128xf32, #tpu.memory_space<vmem>>, vector<1x8x128xf32>
    %229 = vector.shape_cast %228 : vector<1x8x128xf32> to vector<8x128xf32>
    %230 = vector.shape_cast %227 : vector<8x128xf32> to vector<1x8x128xf32>
    tpu.vector_store %arg12[%c1_182, %c0_183, %c0_184], %230 {strides = array<i32>} : memref<2x8x128xf32, #tpu.memory_space<vmem>>, vector<1x8x128xf32>,
    %c3_i32_185 = arith.constant 3 : i32
    %c1_186 = arith.constant 1 : index
    %c0_187 = arith.constant 0 : index
    %c0_188 = arith.constant 0 : index
    %231 = vector.load %arg12[%c1_186, %c0_187, %c0_188] : memref<2x8x128xf32, #tpu.memory_space<vmem>>, vector<1x8x128xf32>
    %232 = vector.shape_cast %231 : vector<1x8x128xf32> to vector<8x128xf32>
    %233 = arith.index_cast %c3_i32_185 : i32 to index
    %c0_189 = arith.constant 0 : index
    %c0_190 = arith.constant 0 : index
    %234 = vector.load %arg14[%233, %c0_189, %c0_190] : memref<8x8x128xf32, #tpu.memory_space<vmem>>, vector<1x8x128xf32>
    %235 = vector.shape_cast %234 : vector<1x8x128xf32> to vector<8x128xf32>
    %cst_191 = arith.constant dense<0.000000e+00> : vector<8x128xf32>
    %236 = tpu.matmul %232, %188, %cst_191 {dimension_numbers = #tpu.dot_dimension_numbers<[1], [0], [0], [1], [0, 0, 1, 1], [], []>} : vector<8x128xf32>, vector<128x128xf32>, vector<8x128xf32> -> vector<8x128xf32>
    %237 = arith.addf %235, %236 : vector<8x128xf32>
    %238 = math.tanh %237 : vector<8x128xf32>
    %c1_192 = arith.constant 1 : index
    %c0_193 = arith.constant 0 : index
    %c0_194 = arith.constant 0 : index
    %239 = vector.load %arg12[%c1_192, %c0_193, %c0_194] : memref<2x8x128xf32, #tpu.memory_space<vmem>>, vector<1x8x128xf32>
    %240 = vector.shape_cast %239 : vector<1x8x128xf32> to vector<8x128xf32>
    %241 = vector.shape_cast %238 : vector<8x128xf32> to vector<1x8x128xf32>
    tpu.vector_store %arg12[%c1_192, %c0_193, %c0_194], %241 {strides = array<i32>} : memref<2x8x128xf32, #tpu.memory_space<vmem>>, vector<1x8x128xf32>,
    %c4_i32_195 = arith.constant 4 : i32
    %c1_196 = arith.constant 1 : index
    %c0_197 = arith.constant 0 : index
    %c0_198 = arith.constant 0 : index
    %242 = vector.load %arg12[%c1_196, %c0_197, %c0_198] : memref<2x8x128xf32, #tpu.memory_space<vmem>>, vector<1x8x128xf32>
    %243 = vector.shape_cast %242 : vector<1x8x128xf32> to vector<8x128xf32>
    %244 = arith.index_cast %c4_i32_195 : i32 to index
    %c0_199 = arith.constant 0 : index
    %c0_200 = arith.constant 0 : index
    %245 = vector.load %arg14[%244, %c0_199, %c0_200] : memref<8x8x128xf32, #tpu.memory_space<vmem>>, vector<1x8x128xf32>
    %246 = vector.shape_cast %245 : vector<1x8x128xf32> to vector<8x128xf32>
    %cst_201 = arith.constant dense<0.000000e+00> : vector<8x128xf32>
    %247 = tpu.matmul %243, %188, %cst_201 {dimension_numbers = #tpu.dot_dimension_numbers<[1], [0], [0], [1], [0, 0, 1, 1], [], []>} : vector<8x128xf32>, vector<128x128xf32>, vector<8x128xf32> -> vector<8x128xf32>
    %248 = arith.addf %246, %247 : vector<8x128xf32>
    %249 = math.tanh %248 : vector<8x128xf32>
    %c1_202 = arith.constant 1 : index
    %c0_203 = arith.constant 0 : index
    %c0_204 = arith.constant 0 : index
    %250 = vector.load %arg12[%c1_202, %c0_203, %c0_204] : memref<2x8x128xf32, #tpu.memory_space<vmem>>, vector<1x8x128xf32>
    %251 = vector.shape_cast %250 : vector<1x8x128xf32> to vector<8x128xf32>
    %252 = vector.shape_cast %249 : vector<8x128xf32> to vector<1x8x128xf32>
    tpu.vector_store %arg12[%c1_202, %c0_203, %c0_204], %252 {strides = array<i32>} : memref<2x8x128xf32, #tpu.memory_space<vmem>>, vector<1x8x128xf32>,
    %c5_i32_205 = arith.constant 5 : i32
    %c1_206 = arith.constant 1 : index
    %c0_207 = arith.constant 0 : index
    %c0_208 = arith.constant 0 : index
    %253 = vector.load %arg12[%c1_206, %c0_207, %c0_208] : memref<2x8x128xf32, #tpu.memory_space<vmem>>, vector<1x8x128xf32>
    %254 = vector.shape_cast %253 : vector<1x8x128xf32> to vector<8x128xf32>
    %255 = arith.index_cast %c5_i32_205 : i32 to index
    %c0_209 = arith.constant 0 : index
    %c0_210 = arith.constant 0 : index
    %256 = vector.load %arg14[%255, %c0_209, %c0_210] : memref<8x8x128xf32, #tpu.memory_space<vmem>>, vector<1x8x128xf32>
    %257 = vector.shape_cast %256 : vector<1x8x128xf32> to vector<8x128xf32>
    %cst_211 = arith.constant dense<0.000000e+00> : vector<8x128xf32>
    %258 = tpu.matmul %254, %188, %cst_211 {dimension_numbers = #tpu.dot_dimension_numbers<[1], [0], [0], [1], [0, 0, 1, 1], [], []>} : vector<8x128xf32>, vector<128x128xf32>, vector<8x128xf32> -> vector<8x128xf32>
    %259 = arith.addf %257, %258 : vector<8x128xf32>
    %260 = math.tanh %259 : vector<8x128xf32>
    %c1_212 = arith.constant 1 : index
    %c0_213 = arith.constant 0 : index
    %c0_214 = arith.constant 0 : index
    %261 = vector.load %arg12[%c1_212, %c0_213, %c0_214] : memref<2x8x128xf32, #tpu.memory_space<vmem>>, vector<1x8x128xf32>
    %262 = vector.shape_cast %261 : vector<1x8x128xf32> to vector<8x128xf32>
    %263 = vector.shape_cast %260 : vector<8x128xf32> to vector<1x8x128xf32>
    tpu.vector_store %arg12[%c1_212, %c0_213, %c0_214], %263 {strides = array<i32>} : memref<2x8x128xf32, #tpu.memory_space<vmem>>, vector<1x8x128xf32>,
    %c6_i32_215 = arith.constant 6 : i32
    %c1_216 = arith.constant 1 : index
    %c0_217 = arith.constant 0 : index
    %c0_218 = arith.constant 0 : index
    %264 = vector.load %arg12[%c1_216, %c0_217, %c0_218] : memref<2x8x128xf32, #tpu.memory_space<vmem>>, vector<1x8x128xf32>
    %265 = vector.shape_cast %264 : vector<1x8x128xf32> to vector<8x128xf32>
    %266 = arith.index_cast %c6_i32_215 : i32 to index
    %c0_219 = arith.constant 0 : index
    %c0_220 = arith.constant 0 : index
    %267 = vector.load %arg14[%266, %c0_219, %c0_220] : memref<8x8x128xf32, #tpu.memory_space<vmem>>, vector<1x8x128xf32>
    %268 = vector.shape_cast %267 : vector<1x8x128xf32> to vector<8x128xf32>
    %cst_221 = arith.constant dense<0.000000e+00> : vector<8x128xf32>
    %269 = tpu.matmul %265, %188, %cst_221 {dimension_numbers = #tpu.dot_dimension_numbers<[1], [0], [0], [1], [0, 0, 1, 1], [], []>} : vector<8x128xf32>, vector<128x128xf32>, vector<8x128xf32> -> vector<8x128xf32>
    %270 = arith.addf %268, %269 : vector<8x128xf32>
    %271 = math.tanh %270 : vector<8x128xf32>
    %c1_222 = arith.constant 1 : index
    %c0_223 = arith.constant 0 : index
    %c0_224 = arith.constant 0 : index
    %272 = vector.load %arg12[%c1_222, %c0_223, %c0_224] : memref<2x8x128xf32, #tpu.memory_space<vmem>>, vector<1x8x128xf32>
    %273 = vector.shape_cast %272 : vector<1x8x128xf32> to vector<8x128xf32>
    %274 = vector.shape_cast %271 : vector<8x128xf32> to vector<1x8x128xf32>
    tpu.vector_store %arg12[%c1_222, %c0_223, %c0_224], %274 {strides = array<i32>} : memref<2x8x128xf32, #tpu.memory_space<vmem>>, vector<1x8x128xf32>,
    %c7_i32_225 = arith.constant 7 : i32
    %c1_226 = arith.constant 1 : index
    %c0_227 = arith.constant 0 : index
    %c0_228 = arith.constant 0 : index
    %275 = vector.load %arg12[%c1_226, %c0_227, %c0_228] : memref<2x8x128xf32, #tpu.memory_space<vmem>>, vector<1x8x128xf32>
    %276 = vector.shape_cast %275 : vector<1x8x128xf32> to vector<8x128xf32>
    %277 = arith.index_cast %c7_i32_225 : i32 to index
    %c0_229 = arith.constant 0 : index
    %c0_230 = arith.constant 0 : index
    %278 = vector.load %arg14[%277, %c0_229, %c0_230] : memref<8x8x128xf32, #tpu.memory_space<vmem>>, vector<1x8x128xf32>
    %279 = vector.shape_cast %278 : vector<1x8x128xf32> to vector<8x128xf32>
    %cst_231 = arith.constant dense<0.000000e+00> : vector<8x128xf32>
    %280 = tpu.matmul %276, %188, %cst_231 {dimension_numbers = #tpu.dot_dimension_numbers<[1], [0], [0], [1], [0, 0, 1, 1], [], []>} : vector<8x128xf32>, vector<128x128xf32>, vector<8x128xf32> -> vector<8x128xf32>
    %281 = arith.addf %279, %280 : vector<8x128xf32>
    %282 = math.tanh %281 : vector<8x128xf32>
    %c1_232 = arith.constant 1 : index
    %c0_233 = arith.constant 0 : index
    %c0_234 = arith.constant 0 : index
    %283 = vector.load %arg12[%c1_232, %c0_233, %c0_234] : memref<2x8x128xf32, #tpu.memory_space<vmem>>, vector<1x8x128xf32>
    %284 = vector.shape_cast %283 : vector<1x8x128xf32> to vector<8x128xf32>
    %285 = vector.shape_cast %282 : vector<8x128xf32> to vector<1x8x128xf32>
    tpu.vector_store %arg12[%c1_232, %c0_233, %c0_234], %285 {strides = array<i32>} : memref<2x8x128xf32, #tpu.memory_space<vmem>>, vector<1x8x128xf32>,
    %c8_i32_235 = arith.constant 8 : i32
    %c0_i32_236 = arith.constant 0 : i32
    %286 = arith.cmpi eq, %arg1, %c0_i32_236 : i32
    %287 = arith.extui %286 : i1 to i32
    %c0_i32_237 = arith.constant 0 : i32
    %288 = arith.cmpi ne, %287, %c0_i32_237 : i32
    scf.if %288 {
      %c1_238 = arith.constant 1 : index
      %c0_239 = arith.constant 0 : index
      %c0_240 = arith.constant 0 : index
      %289 = vector.load %arg12[%c1_238, %c0_239, %c0_240] : memref<2x8x128xf32, #tpu.memory_space<vmem>>, vector<1x8x128xf32>
      %290 = vector.shape_cast %289 : vector<1x8x128xf32> to vector<8x128xf32>
      %c0_241 = arith.constant 0 : index
      %c0_242 = arith.constant 0 : index
      %291 = vector.load %arg9[%c0_241, %c0_242] : memref<128x128xf32, #tpu.memory_space<vmem>>, vector<128x128xf32>
      %cst_243 = arith.constant dense<0.000000e+00> : vector<8x128xf32>
      %292 = tpu.matmul %290, %291, %cst_243 {dimension_numbers = #tpu.dot_dimension_numbers<[1], [0], [0], [1], [0, 0, 1, 1], [], []>} : vector<8x128xf32>, vector<128x128xf32>, vector<8x128xf32> -> vector<8x128xf32>
      %c0_244 = arith.constant 0 : index
      %c0_245 = arith.constant 0 : index
      %293 = vector.load %arg10[%c0_244, %c0_245] : memref<1x128xf32, #tpu.memory_space<vmem>>, vector<1x128xf32>
      %294 = vector.broadcast %293 : vector<1x128xf32> to vector<8x128xf32>
      %295 = arith.addf %292, %294 : vector<8x128xf32>
      %c0_246 = arith.constant 0 : index
      %c0_247 = arith.constant 0 : index
      %296 = vector.load %arg11[%c0_246, %c0_247] : memref<8x128xf32, #tpu.memory_space<vmem>>, vector<8x128xf32>
      tpu.vector_store %arg11[%c0_246, %c0_247], %295 {strides = array<i32>} : memref<8x128xf32, #tpu.memory_space<vmem>>, vector<8x128xf32>,
    } else {
    }
    return
  }
  func.func @transform_0(%arg0: i32, %arg1: i32) -> (i32, i32, i32) {
    %c0_i32 = arith.constant 0 : i32
    %c0_i32_0 = arith.constant 0 : i32
    return %arg0, %arg1, %c0_i32 : i32, i32, i32
  }
  func.func @transform_1(%arg0: i32, %arg1: i32) -> (i32, i32) {
    %c0_i32 = arith.constant 0 : i32
    %c0_i32_0 = arith.constant 0 : i32
    %c0_i32_1 = arith.constant 0 : i32
    return %c0_i32, %c0_i32_0 : i32, i32
  }
  func.func @transform_2(%arg0: i32, %arg1: i32) -> (i32, i32) {
    %c0_i32 = arith.constant 0 : i32
    %c0_i32_0 = arith.constant 0 : i32
    %c0_i32_1 = arith.constant 0 : i32
    return %c0_i32, %c0_i32_0 : i32, i32
  }
  func.func @transform_3(%arg0: i32, %arg1: i32) -> (i32, i32) {
    %c0_i32 = arith.constant 0 : i32
    %c0_i32_0 = arith.constant 0 : i32
    %c0_i32_1 = arith.constant 0 : i32
    return %c0_i32, %c0_i32_0 : i32, i32
  }
  func.func @transform_4(%arg0: i32, %arg1: i32) -> (i32, i32) {
    %c0_i32 = arith.constant 0 : i32
    %c0_i32_0 = arith.constant 0 : i32
    %c0_i32_1 = arith.constant 0 : i32
    return %c0_i32, %c0_i32_0 : i32, i32
  }
  func.func @transform_5(%arg0: i32, %arg1: i32) -> (i32, i32) {
    %c0_i32 = arith.constant 0 : i32
    %c0_i32_0 = arith.constant 0 : i32
    %c0_i32_1 = arith.constant 0 : i32
    return %c0_i32, %c0_i32_0 : i32, i32
  }
  func.func @transform_6(%arg0: i32, %arg1: i32) -> (i32, i32) {
    %c0_i32 = arith.constant 0 : i32
    %c0_i32_0 = arith.constant 0 : i32
    %c0_i32_1 = arith.constant 0 : i32
    return %c0_i32, %c0_i32_0 : i32, i32
  }
  func.func @transform_7(%arg0: i32, %arg1: i32) -> (i32, i32) {
    %c0_i32 = arith.constant 0 : i32
    %c0_i32_0 = arith.constant 0 : i32
    %c0_i32_1 = arith.constant 0 : i32
    return %c0_i32, %c0_i32_0 : i32, i32
  }
  func.func @transform_8(%arg0: i32, %arg1: i32) -> (i32, i32) {
    %c0_i32 = arith.constant 0 : i32
    %c0_i32_0 = arith.constant 0 : i32
    %c0_i32_1 = arith.constant 0 : i32
    return %c0_i32, %c0_i32_0 : i32, i32
  }
  func.func @transform_9(%arg0: i32, %arg1: i32) -> (i32, i32) {
    %c0_i32 = arith.constant 0 : i32
    %c0_i32_0 = arith.constant 0 : i32
    return %arg0, %c0_i32 : i32, i32
  }
}

</mosaic_0001>

<bundles_post_ra>
// kernel: speech_decoding_forward.1
= control target key start
LH: loop header
LB: loop body
LE: loop exit
PB: predicated region body
PF: predicated region fallthrough
CT: control target
= control target key end

     0   :  { %v3091_v2 = vmov 0.0   ;;  %vm3092_vm0 = vmmov 0   ;;  %vm223_vm1 = vcmask 1041409   ;;  %vm226_vm2 = vcmask 1042434   ;;  %s4324_s1 = inlined_call_operand.vmem [shape: f32[128,128], index: 1, kind: input, shape index: {}]   ;;  %s4325_s2 = inlined_call_operand.vmem [shape: f32[128,128], index: 2, kind: input, shape index: {}]   ;;  %s4326_s0 = inlined_call_operand.vmem [shape: f32[8,8,128], index: 0, kind: input, shape index: {}]   ;;  %s4327_s3 = inlined_call_operand.vmem [shape: f32[1,128], index: 3, kind: input, shape index: {}]   ;;  %s4328_s4 = inlined_call_operand.vmem [shape: f32[128,128], index: 4, kind: input, shape index: {}]   ;;  %s4329_s5 = inlined_call_operand.vmem [shape: f32[128,128], index: 5, kind: input, shape index: {}]   ;;  %s4330_s6 = inlined_call_operand.vmem [shape: f32[1,128], index: 6, kind: input, shape index: {}]   ;;  %s4331_s7 = inlined_call_operand.vmem [shape: f32[128,128], index: 7, kind: input, shape index: {}]   ;;  %s4332_s8 = inlined_call_operand.vmem [shape: f32[1,128], index: 8, kind: input, shape index: {}]   ;;  %s4333_s9 = inlined_call_operand.vmem [shape: f32[8,128], index: 9, kind: output, shape index: {}]  }
   0x1   :  { %v53_v0 = vld [vmem:[%s4324_s1 + $0x78] sm:$0xff]  ;;  %v52_v1 = vld [vmem:[%s4324_s1 + $0x70] sm:$0xff]  ;;  %2402 = vmatprep.subr.mxu1 %v3091_v2  ;;  %2434 = vmatprep.mubr.msk.f32.mxu1 %vm3092_vm0, %v3091_v2  ;;  %v51_v3 = vld [vmem:[%s4324_s1 + $0x68] sm:$0xff]  ;;  %vm229_vm3 = vcmask 1043459   ;;  %vm232_vm4 = vcmask 1044484   ;;  %vm235_vm5 = vcmask 1045509  }
   0x2   :  { %2358 = vmatprep.subr.mxu0 %v53_v0  ;;  %v50_v4 = vld [vmem:[%s4324_s1 + $0x60] sm:$0xff]  ;;  %v3161_v5 = vld [vmem:[%s4325_s2 + $0x78] sm:$0xff]  ;;  %v3167_v6 = vld [vmem:[%s4325_s2 + $0x70] sm:$0xff]  ;;  %vm238_vm6 = vcmask 1046534   ;;  %vm241_vm7 = vcmask 1047559  }
   0x3   :  { %2359 = vmatpush3.msra.mxu0 %v53_v0  ;;  %2403 = vmatpush3.msra.mxu1 %v3161_v5  ;;  %v49_v7 = vld [vmem:[%s4324_s1 + $0x58] sm:$0xff]  ;;  %v71_v8 = vld [vmem:[%s4326_s0] sm:$0xff]  ;;  %v3180_v9 = vld [vmem:[%s4325_s2 + $0x68] sm:$0xff] }
   0x4   :  { %2360 = vmatprep.subr.mxu0 %v52_v1  ;;  %2404 = vmatprep.subr.mxu1 %v3091_v2  ;;  %v48_v10 = vld [vmem:[%s4324_s1 + $0x50] sm:$0xff]  ;;  %v3189_v11 = vld [vmem:[%s4325_s2 + $0x60] sm:$0xff]  ;;  %v47_v12 = vld [vmem:[%s4324_s1 + $0x48] sm:$0xff] }
   0x5   :  { %2361 = vmatpush3.msra.mxu0 %v52_v1  ;;  %2405 = vmatpush3.msra.mxu1 %v3167_v6  ;;  %v3199_v13 = vld [vmem:[%s4325_s2 + $0x58] sm:$0xff]  ;;  %v46_v14 = vld [vmem:[%s4324_s1 + $0x40] sm:$0xff]  ;;  %v3209_v15 = vld [vmem:[%s4325_s2 + $0x50] sm:$0xff] }
   0x6   :  { %2362 = vmatprep.subr.mxu0 %v51_v3  ;;  %2406 = vmatprep.subr.mxu1 %v3091_v2  ;;  %v45_v16 = vld [vmem:[%s4324_s1 + $0x38] sm:$0xff]  ;;  %v3219_v17 = vld [vmem:[%s4325_s2 + $0x48] sm:$0xff]  ;;  %v44_v18 = vld [vmem:[%s4324_s1 + $0x30] sm:$0xff] }
   0x7   :  { %2363 = vmatpush3.msra.mxu0 %v51_v3  ;;  %2390 = vmatprep.mubr.f32.mxu0 %v71_v8  ;;  %v3229_v19 = vld [vmem:[%s4325_s2 + $0x40] sm:$0xff]  ;;  %v43_v20 = vld [vmem:[%s4324_s1 + $0x28] sm:$0xff]  ;;  %v3239_v21 = vld [vmem:[%s4325_s2 + $0x38] sm:$0xff] }
   0x8   :  { %2364 = vmatprep.subr.mxu0 %v50_v4  ;;  %2407 = vmatpush3.msra.mxu1 %v3180_v9  ;;  %v42_v22 = vld [vmem:[%s4324_s1 + $0x20] sm:$0xff]  ;;  %v3249_v23 = vld [vmem:[%s4325_s2 + $0x30] sm:$0xff]  ;;  %v41_v24 = vld [vmem:[%s4324_s1 + $0x18] sm:$0xff] }
   0x9   :  { %2365 = vmatpush3.msra.mxu0 %v50_v4  ;;  %2408 = vmatprep.subr.mxu1 %v3091_v2  ;;  %v3259_v25 = vld [vmem:[%s4325_s2 + $0x28] sm:$0xff]  ;;  %v40_v26 = vld [vmem:[%s4324_s1 + $0x10] sm:$0xff]  ;;  %v3269_v27 = vld [vmem:[%s4325_s2 + $0x20] sm:$0xff] }
   0xa   :  { %2366 = vmatprep.subr.mxu0 %v49_v7  ;;  %2409 = vmatpush3.msra.mxu1 %v3189_v11  ;;  %v39_v28 = vld [vmem:[%s4324_s1 + $0x8] sm:$0xff]  ;;  %v3279_v29 = vld [vmem:[%s4325_s2 + $0x18] sm:$0xff]  ;;  %v38_v30 = vld [vmem:[%s4324_s1] sm:$0xff] }
   0xb   :  { %2367 = vmatpush3.msra.mxu0 %v49_v7  ;;  %2410 = vmatprep.subr.mxu1 %v3091_v2  ;;  %v3289_v31 = vld [vmem:[%s4325_s2 + $0x10] sm:$0xff]  ;;  %v72_v32 = vld [vmem:[%s4326_s0 + $0x8] sm:$0xff]  ;;  %v3309_v35 = vld [vmem:[%s4325_s2] sm:$0xff] }
   0xc   :  { %2368 = vmatprep.subr.mxu0 %v48_v10  ;;  %2411 = vmatpush3.msra.mxu1 %v3199_v13  ;;  %v73_v33 = vld [vmem:[%s4326_s0 + $0x10] sm:$0xff]  ;;  %v3302_v34 = vld [vmem:[%s4325_s2 + $0x8] sm:$0xff]  ;;  %v74_v36 = vld [vmem:[%s4326_s0 + $0x18] sm:$0xff] }
   0xd   :  { %2369 = vmatpush3.msra.mxu0 %v48_v10  ;;  %2412 = vmatprep.subr.mxu1 %v3091_v2  ;;  %v75_v37 = vld [vmem:[%s4326_s0 + $0x20] sm:$0xff]  ;;  %v76_v38 = vld [vmem:[%s4326_s0 + $0x28] sm:$0xff]  ;;  %v77_v39 = vld [vmem:[%s4326_s0 + $0x30] sm:$0xff] }
   0xe   :  { %2370 = vmatprep.subr.mxu0 %v47_v12  ;;  %2413 = vmatpush3.msra.mxu1 %v3209_v15  ;;  %v78_v40 = vld [vmem:[%s4326_s0 + $0x38] sm:$0xff]  ;;  %v3405_v46 = vld [vmem:[%s4327_s3] ss:$0 sm:$0xff] }
   0xf   :  { %2371 = vmatpush3.msra.mxu0 %v47_v12  ;;  %2414 = vmatprep.subr.mxu1 %v3091_v2 }
  0x10   :  { %2372 = vmatprep.subr.mxu0 %v46_v14  ;;  %2415 = vmatpush3.msra.mxu1 %v3219_v17 }
  0x11   :  { %2373 = vmatpush3.msra.mxu0 %v46_v14  ;;  %2416 = vmatprep.subr.mxu1 %v3091_v2 }
  0x12   :  { %2374 = vmatprep.subr.mxu0 %v45_v16  ;;  %2417 = vmatpush3.msra.mxu1 %v3229_v19 }
  0x13   :  { %2375 = vmatpush3.msra.mxu0 %v45_v16  ;;  %2418 = vmatprep.subr.mxu1 %v3091_v2 }
  0x14   :  { %2376 = vmatprep.subr.mxu0 %v44_v18  ;;  %2419 = vmatpush3.msra.mxu1 %v3239_v21 }
  0x15   :  { %2377 = vmatpush3.msra.mxu0 %v44_v18  ;;  %2420 = vmatprep.subr.mxu1 %v3091_v2 }
  0x16   :  { %2378 = vmatprep.subr.mxu0 %v43_v20  ;;  %2421 = vmatpush3.msra.mxu1 %v3249_v23 }
  0x17   :  { %2379 = vmatpush3.msra.mxu0 %v43_v20  ;;  %2422 = vmatprep.subr.mxu1 %v3091_v2 }
  0x18   :  { %2380 = vmatprep.subr.mxu0 %v42_v22  ;;  %2423 = vmatpush3.msra.mxu1 %v3259_v25 }
  0x19   :  { %2381 = vmatpush3.msra.mxu0 %v42_v22  ;;  %2424 = vmatprep.subr.mxu1 %v3091_v2 }
  0x1a   :  { %2382 = vmatprep.subr.mxu0 %v41_v24  ;;  %2425 = vmatpush3.msra.mxu1 %v3269_v27 }
  0x1b   :  { %2383 = vmatpush3.msra.mxu0 %v41_v24  ;;  %2426 = vmatprep.subr.mxu1 %v3091_v2 }
  0x1c   :  { %2384 = vmatprep.subr.mxu0 %v40_v26  ;;  %2427 = vmatpush3.msra.mxu1 %v3279_v29 }
  0x1d   :  { %2385 = vmatpush3.msra.mxu0 %v40_v26  ;;  %2428 = vmatprep.subr.mxu1 %v3091_v2 }
  0x1e   :  { %2386 = vmatprep.subr.mxu0 %v39_v28  ;;  %2429 = vmatpush3.msra.mxu1 %v3289_v31 }
  0x1f   :  { %2387 = vmatpush3.msra.mxu0 %v39_v28  ;;  %2430 = vmatprep.subr.mxu1 %v3091_v2 }
  0x20   :  { %2388 = vmatprep.subr.mxu0 %v38_v30  ;;  %2431 = vmatpush3.msra.mxu1 %v3302_v34 }
  0x21   :  { %2389 = vmatpush3.msra.mxu0 %v38_v30  ;;  %2432 = vmatprep.subr.mxu1 %v3091_v2 }
  0x22   :  { %2391 = vmatmul.mubr.f32.vlgmr.msra.gmra.mxu0 %v72_v32  ;;  %2437 = vmatprep.subr.mxu0 %v3091_v2 }
  0x23   :  { %2393 = vmatprep.mubr.f32.mxu0 %v73_v33  ;;  %2433 = vmatpush3.msra.mxu1 %v3309_v35 }
  0x24   :  { %2438 = vmatpush3.msra.mxu0 %v3161_v5  ;;  %2435 = vmatmul.mubr.f32.vlgmr.msra.gmra.mxu1 %v3091_v2 }
  0x25   :  { %2439 = vmatprep.subr.mxu0 %v3091_v2  ;;  %2472 = vmatprep.subr.mxu1 %v3091_v2 }
  0x26   :  { %2394 = vmatmul.mubr.f32.gmra.mxu0 %v74_v36  ;;  %2473 = vmatpush3.msra.mxu1 %v3161_v5 }
  0x27   :  { %2396 = vmatprep.mubr.f32.mxu0 %v75_v37  ;;  %2440 = vmatpush3.msra.mxu0 %v3167_v6 }
  0x28   :  { %2441 = vmatprep.subr.mxu0 %v3091_v2  ;;  %2474 = vmatprep.subr.mxu1 %v3091_v2 }
  0x29   :  { %2442 = vmatpush3.msra.mxu0 %v3180_v9  ;;  %2475 = vmatpush3.msra.mxu1 %v3167_v6 }
  0x2a   :  { %2397 = vmatmul.mubr.f32.gmra.mxu0 %v76_v38  ;;  %2443 = vmatprep.subr.mxu0 %v3091_v2 }
  0x2b   :  { %2399 = vmatprep.mubr.f32.mxu0 %v77_v39  ;;  %2444 = vmatpush3.msra.mxu0 %v3189_v11 }
  0x2c   :  { %2476 = vmatprep.subr.mxu1 %v3091_v2  ;;  %2445 = vmatprep.subr.mxu0 %v3091_v2 }
  0x2d   :  { %2446 = vmatpush3.msra.mxu0 %v3199_v13  ;;  %2477 = vmatpush3.msra.mxu1 %v3180_v9 }
  0x2e   :  { %2400 = vmatmul.mubr.f32.gmra.mxu0 %v78_v40  ;;  %2447 = vmatprep.subr.mxu0 %v3091_v2 }
  0x2f   :  { %2469 = vmatprep.mubr.msk.f32.mxu0 %vm3092_vm0, %v3091_v2  ;;  %2448 = vmatpush3.msra.mxu0 %v3209_v15 }
  0x30   :  { %2478 = vmatprep.subr.mxu1 %v3091_v2  ;;  %2449 = vmatprep.subr.mxu0 %v3091_v2 }
  0x31   :  { %2479 = vmatpush3.msra.mxu1 %v3189_v11  ;;  %2450 = vmatpush3.msra.mxu0 %v3219_v17 }
  0x32   :  { %2480 = vmatprep.subr.mxu1 %v3091_v2  ;;  %2451 = vmatprep.subr.mxu0 %v3091_v2 }
  0x33   :  { %2481 = vmatpush3.msra.mxu1 %v3199_v13  ;;  %2452 = vmatpush3.msra.mxu0 %v3229_v19 }
  0x34   :  { %2482 = vmatprep.subr.mxu1 %v3091_v2  ;;  %2453 = vmatprep.subr.mxu0 %v3091_v2 }
  0x35   :  { %2483 = vmatpush3.msra.mxu1 %v3209_v15  ;;  %2454 = vmatpush3.msra.mxu0 %v3239_v21 }
  0x36   :  { %2484 = vmatprep.subr.mxu1 %v3091_v2  ;;  %2455 = vmatprep.subr.mxu0 %v3091_v2 }
  0x37   :  { %2485 = vmatpush3.msra.mxu1 %v3219_v17  ;;  %2456 = vmatpush3.msra.mxu0 %v3249_v23 }
  0x38   :  { %2486 = vmatprep.subr.mxu1 %v3091_v2  ;;  %2457 = vmatprep.subr.mxu0 %v3091_v2 }
  0x39   :  { %2487 = vmatpush3.msra.mxu1 %v3229_v19  ;;  %2458 = vmatpush3.msra.mxu0 %v3259_v25 }
  0x3a   :  { %2488 = vmatprep.subr.mxu1 %v3091_v2  ;;  %2459 = vmatprep.subr.mxu0 %v3091_v2 }
  0x3b   :  { %2489 = vmatpush3.msra.mxu1 %v3239_v21  ;;  %2460 = vmatpush3.msra.mxu0 %v3269_v27 }
  0x3c   :  { %2490 = vmatprep.subr.mxu1 %v3091_v2  ;;  %2461 = vmatprep.subr.mxu0 %v3091_v2 }
  0x3d   :  { %2491 = vmatpush3.msra.mxu1 %v3249_v23  ;;  %2462 = vmatpush3.msra.mxu0 %v3279_v29 }
  0x3e   :  { %2492 = vmatprep.subr.mxu1 %v3091_v2  ;;  %2463 = vmatprep.subr.mxu0 %v3091_v2 }
  0x3f   :  { %2493 = vmatpush3.msra.mxu1 %v3259_v25  ;;  %2464 = vmatpush3.msra.mxu0 %v3289_v31 }
  0x40   :  { %2494 = vmatprep.subr.mxu1 %v3091_v2  ;;  %2465 = vmatprep.subr.mxu0 %v3091_v2 }
  0x41   :  { %2495 = vmatpush3.msra.mxu1 %v3269_v27  ;;  %2466 = vmatpush3.msra.mxu0 %v3302_v34 }
  0x42   :  { %2496 = vmatprep.subr.mxu1 %v3091_v2  ;;  %2467 = vmatprep.subr.mxu0 %v3091_v2 }
  0x43   :  { %2497 = vmatpush3.msra.mxu1 %v3279_v29  ;;  %2468 = vmatpush3.msra.mxu0 %v3309_v35 }
  0x44   :  { %2498 = vmatprep.subr.mxu1 %v3091_v2  ;;  %2504 = vmatprep.mubr.msk.f32.mxu1 %vm3092_vm0, %v3091_v2 }
  0x45   :  { %2499 = vmatpush3.msra.mxu1 %v3289_v31  ;;  %2507 = vmatprep.subr.mxu0 %v3091_v2 }
  0x46   :  { %2500 = vmatprep.subr.mxu1 %v3091_v2 }
  0x47   :  { %2501 = vmatpush3.msra.mxu1 %v3302_v34 }
  0x48   :  { %2502 = vmatprep.subr.mxu1 %v3091_v2 }
  0x49   :  { %2503 = vmatpush3.msra.mxu1 %v3309_v35 }
  0x4a   :  { %2542 = vmatprep.subr.mxu1 %v3091_v2 }
  0xe2   :  { %v2392_v41 = vpop.f32.mrf.mxu0 }
  0xe3   :  { %185 = vst [vmem:[#allocation3 + $0x8] sm:$0xff] %v2392_v41 }
  0xe4   :  { %v145_v42 = vpop.f32.mrf.mxu0  ;;  %v3400_v44 = vpop.f32.mrf.mxu1 }
  0xe5   :  { %184 = vst [vmem:[#allocation3] sm:$0xff] %v145_v42 }
  0xe6   :  { %v2395_v43 = vpop.f32.mrf.mxu0  ;;  %v2436_v47 = vpop.f32.mrf.mxu1 }
  0xe7   :  { %187 = vst [vmem:[#allocation3 + $0x18] sm:$0xff] %v2395_v43 }
  0xe8   :  { %v155_v45 = vpop.f32.mrf.mxu0 }
  0xe9   :  { %186 = vst [vmem:[#allocation3 + $0x10] sm:$0xff] %v155_v45 }
  0xea   :  { %v2398_v48 = vpop.f32.mrf.mxu0  ;;  %v193_v49 = vld [vmem:[#allocation3 + $0x8] sm:$0x1]  ;;  %v246_v50 = vld [vmem:[#allocation3 + $0x9] sm:$0x1]  ;;  %v287_v51 = vld [vmem:[#allocation3 + $0xa] sm:$0x1] }
  0xeb   :  { %189 = vst [vmem:[#allocation3 + $0x28] sm:$0xff] %v2398_v48  ;;  %v207_v52 = vadd.f32 %v3405_v46, %v193_v49  ;;  %v254_v53 = vadd.f32 %v3405_v46, %v246_v50  ;;  %v328_v54 = vld [vmem:[#allocation3 + $0xb] sm:$0x1]  ;;  %v369_v55 = vld [vmem:[#allocation3 + $0xc] sm:$0x1]  ;;  %v3412_v12 = vadd.f32 %v3405_v46, %v287_v51 }
  0xec   :  { %v410_v56 = vld [vmem:[#allocation3 + $0xd] sm:$0x1]  ;;  %v165_v57 = vpop.f32.mrf.mxu0  ;;  %v192_v58 = vld [vmem:[#allocation3] sm:$0x1]  ;;  %v245_v59 = vld [vmem:[#allocation3 + $0x1] sm:$0x1]  ;;  %v3415_v14 = vadd.f32 %v3405_v46, %v328_v54  ;;  %v3418_v16 = vadd.f32 %v3405_v46, %v369_v55 }
  0xed   :  { %v286_v60 = vld [vmem:[#allocation3 + $0x2] sm:$0x1]  ;;  %188 = vst [vmem:[#allocation3 + $0x20] sm:$0xff] %v165_v57  ;;  %v206_v61 = vadd.f32 %v3405_v46, %v192_v58  ;;  %v222_v62 = vrot.slane %v207_v52, 7  ;;  %v253_v63 = vadd.f32 %v3405_v46, %v245_v59  ;;  %v269_v0 = vrot.slane %v254_v53, 7 }
  0xee   :  { %v327_v1 = vld [vmem:[#allocation3 + $0x3] sm:$0x1]  ;;  %v368_v3 = vld [vmem:[#allocation3 + $0x4] sm:$0x1]  ;;  %v2401_v4 = vpop.f32.mrf.mxu0  ;;  %v195_v7 = vld [vmem:[#allocation3 + $0x18] sm:$0x1]  ;;  %v3421_v18 = vadd.f32 %v3405_v46, %v410_v56  ;;  %v3427_v26 = vadd.f32 %v3405_v46, %v286_v60 }
  0xef   :  { %v248_v8 = vld [vmem:[#allocation3 + $0x19] sm:$0x1]  ;;  %v289_v10 = vld [vmem:[#allocation3 + $0x1a] sm:$0x1]  ;;  %191 = vst [vmem:[#allocation3 + $0x38] sm:$0xff] %v2401_v4  ;;  %v209_v20 = vadd.f32 %v3405_v46, %v195_v7  ;;  %v270_v24 = vsel %vm223_vm1, %v269_v0, %v253_v63  ;;  %v224_v37 = vsel %vm223_vm1, %v222_v62, %v206_v61  ;;  %v3434_v41 = vadd.f32 %v3405_v46, %v327_v1 }
  0xf0   :  { %v256_v22 = vadd.f32 %v3405_v46, %v248_v8  ;;  %v330_v28 = vld [vmem:[#allocation3 + $0x1b] sm:$0x1]  ;;  %v371_v30 = vld [vmem:[#allocation3 + $0x1c] sm:$0x1]  ;;  %v409_v32 = vld [vmem:[#allocation3 + $0x5] sm:$0x1]  ;;  %v175_v33 = vpop.f32.mrf.mxu0  ;;  %v3431_v40 = vadd.f32 %v3405_v46, %v289_v10  ;;  %v3437_v42 = vadd.f32 %v3405_v46, %v368_v3 }
  0xf1   :  { %v194_v36 = vld [vmem:[#allocation3 + $0x10] sm:$0x1]  ;;  %v247_v38 = vld [vmem:[#allocation3 + $0x11] sm:$0x1]  ;;  %v288_v39 = vld [vmem:[#allocation3 + $0x12] sm:$0x1]  ;;  %v3445_v55 = vadd.f32 %v3405_v46, %v330_v28  ;;  %v3448_v56 = vadd.f32 %v3405_v46, %v371_v30  ;;  %v3451_v57 = vadd.f32 %v3405_v46, %v409_v32 }
  0xf2   :  { %190 = vst [vmem:[#allocation3 + $0x30] sm:$0xff] %v175_v33  ;;  %v208_v43 = vadd.f32 %v3405_v46, %v194_v36  ;;  %v228_v45 = vrot.slane %v209_v20, 5  ;;  %v255_v47 = vadd.f32 %v3405_v46, %v247_v38  ;;  %v273_v48 = vrot.slane %v256_v22, 5  ;;  %v329_v49 = vld [vmem:[#allocation3 + $0x13] sm:$0x1] }
  0xf3   :  { %v370_v50 = vld [vmem:[#allocation3 + $0x14] sm:$0x1]  ;;  %v197_v51 = vld [vmem:[#allocation3 + $0x28] sm:$0x1]  ;;  %v250_v52 = vld [vmem:[#allocation3 + $0x29] sm:$0x1]  ;;  %v3442_v54 = vadd.f32 %v3405_v46, %v288_v39  ;;  %v3459_v7 = vadd.f32 %v3405_v46, %v329_v49 }
  0xf4   :  { %v291_v53 = vld [vmem:[#allocation3 + $0x2a] sm:$0x1]  ;;  %v211_v58 = vadd.f32 %v3405_v46, %v197_v51  ;;  %v225_v59 = vrot.slane %v208_v43, 6  ;;  %v258_v60 = vadd.f32 %v3405_v46, %v250_v52  ;;  %v271_v61 = vrot.slane %v255_v47, 6  ;;  %v332_v62 = vld [vmem:[#allocation3 + $0x2b] sm:$0x1] }
  0xf5   :  { %v373_v63 = vld [vmem:[#allocation3 + $0x2c] sm:$0x1]  ;;  %v196_v0 = vld [vmem:[#allocation3 + $0x20] sm:$0x1]  ;;  %v249_v1 = vld [vmem:[#allocation3 + $0x21] sm:$0x1]  ;;  %v3456_v4 = vadd.f32 %v3405_v46, %v291_v53  ;;  %v3462_v8 = vadd.f32 %v3405_v46, %v332_v62  ;;  %v3465_v10 = vadd.f32 %v3405_v46, %v370_v50 }
  0xf6   :  { %v290_v3 = vld [vmem:[#allocation3 + $0x22] sm:$0x1]  ;;  %v210_v20 = vadd.f32 %v3405_v46, %v196_v0  ;;  %v227_v22 = vsel %vm226_vm2, %v225_v59, %v224_v37  ;;  %v257_v28 = vadd.f32 %v3405_v46, %v249_v1  ;;  %v331_v30 = vld [vmem:[#allocation3 + $0x23] sm:$0x1]  ;;  %v3471_v32 = vadd.f32 %v3405_v46, %v373_v63  ;;  %v199_v33 = vld [vmem:[#allocation3 + $0x38] sm:$0x1] }
  0xf7   :  { %v230_v36 = vsel %vm229_vm3, %v228_v45, %v227_v22  ;;  %v234_v38 = vrot.slane %v211_v58, 3  ;;  %v252_v39 = vld [vmem:[#allocation3 + $0x39] sm:$0x1]  ;;  %v272_v43 = vsel %vm226_vm2, %v271_v61, %v270_v24  ;;  %v277_v47 = vrot.slane %v258_v60, 3  ;;  %v293_v37 = vld [vmem:[#allocation3 + $0x3a] sm:$0x1] }
  0xf8   :  { %v213_v49 = vadd.f32 %v3405_v46, %v199_v33  ;;  %v231_v50 = vrot.slane %v210_v20, 4  ;;  %v274_v51 = vsel %vm229_vm3, %v273_v48, %v272_v43  ;;  %v298_v52 = vadd.f32 %v3405_v46, %v290_v3 }
  0xf9   :  { %v198_v53 = vld [vmem:[#allocation3 + $0x30] sm:$0x1]  ;;  %v251_v59 = vld [vmem:[#allocation3 + $0x31] sm:$0x1]  ;;  %v260_v62 = vadd.f32 %v3405_v46, %v252_v39  ;;  %v275_v63 = vrot.slane %v257_v28, 4  ;;  %v301_v45 = vadd.f32 %v3405_v46, %v293_v37  ;;  %v310_v58 = vrot.slane %v3412_v12, 7 }
  0xfa   :  { %v212_v24 = vadd.f32 %v3405_v46, %v198_v53  ;;  %v233_v60 = vsel %vm232_vm4, %v231_v50, %v230_v36  ;;  %v259_v61 = vadd.f32 %v3405_v46, %v251_v59  ;;  %v292_v0 = vld [vmem:[#allocation3 + $0x32] sm:$0x1]  ;;  %v339_v48 = vadd.f32 %v3405_v46, %v331_v30  ;;  %v333_v36 = vld [vmem:[#allocation3 + $0x33] sm:$0x1]  ;;  %v334_v59 = vld [vmem:[#allocation3 + $0x3b] sm:$0x1] }
  0xfb   :  { %v236_v1 = vsel %vm235_vm5, %v234_v38, %v233_v60  ;;  %v240_v3 = vrot.slane %v213_v49, 1  ;;  %v276_v20 = vsel %vm232_vm4, %v275_v63, %v274_v51  ;;  %v300_v22 = vadd.f32 %v3405_v46, %v292_v0  ;;  %v372_v0 = vld [vmem:[#allocation3 + $0x24] sm:$0x1] }
  0xfc   :  { %v237_v28 = vrot.slane %v212_v24, 2  ;;  %v278_v33 = vsel %vm235_vm5, %v277_v47, %v276_v20  ;;  %v279_v12 = vrot.slane %v259_v61, 2  ;;  %v311_v39 = vsel %vm223_vm1, %v310_v58, %v3427_v26 }
  0xfd   :  { %v281_v43 = vrot.slane %v260_v62, 1  ;;  %v312_v50 = vrot.slane %v3442_v54, 6  ;;  %v314_v30 = vrot.slane %v3431_v40, 5  ;;  %v316_v37 = vrot.slane %v298_v52, 4 }
  0xfe   :  { %v239_v38 = vsel %vm238_vm6, %v237_v28, %v236_v1  ;;  %v280_v49 = vsel %vm238_vm6, %v279_v12, %v278_v33  ;;  %v318_v51 = vrot.slane %v3456_v4, 3  ;;  %v320_v53 = vrot.slane %v300_v22, 2  ;;  %v374_v1 = vld [vmem:[#allocation3 + $0x34] sm:$0x1]  ;;  %v375_v33 = vld [vmem:[#allocation3 + $0x3c] sm:$0x1] }
  0xff   :  { %v242_v47 = vsel %vm241_vm7, %v240_v3, %v239_v38  ;;  %v3498_v63 = vsel %vm241_vm7, %v281_v43, %v280_v49  ;;  %v313_v26 = vsel %vm226_vm2, %v312_v50, %v311_v39  ;;  %v341_v54 = vadd.f32 %v3405_v46, %v333_v36  ;;  %v412_v36 = vld [vmem:[#allocation3 + $0x1d] sm:$0x1] }
 0x100   :  { %v604_v40 = vadd.f32 %v3400_v44, %v242_v47  ;;  %v315_v52 = vsel %vm229_vm3, %v314_v30, %v313_v26  ;;  %v322_v62 = vrot.slane %v301_v45, 1  ;;  %v351_v58 = vrot.slane %v3415_v14, 7  ;;  %v413_v30 = vld [vmem:[#allocation3 + $0x25] sm:$0x1] }
 0x101   :  { %v317_v4 = vsel %vm232_vm4, %v316_v37, %v315_v52  ;;  %v342_v24 = vadd.f32 %v3405_v46, %v334_v59  ;;  %v353_v60 = vrot.slane %v3459_v7, 6  ;;  %v357_v61 = vrot.slane %v339_v48, 4  ;;  %v415_v59 = vld [vmem:[#allocation3 + $0x35] sm:$0x1]  ;;  %v416_v52 = vld [vmem:[#allocation3 + $0x3d] sm:$0x1] }
 0x102   :  { %3043 = vtanh.f32 %v604_v40  ;;  %v319_v3 = vsel %vm235_vm5, %v318_v51, %v317_v4  ;;  %v352_v44 = vsel %vm223_vm1, %v351_v58, %v3434_v41  ;;  %v355_v20 = vrot.slane %v3445_v55, 5  ;;  %v411_v41 = vld [vmem:[#allocation3 + $0x15] sm:$0x1] }
 0x103   :  { %v321_v45 = vsel %vm238_vm6, %v320_v53, %v319_v3  ;;  %v354_v14 = vsel %vm226_vm2, %v353_v60, %v352_v44  ;;  %v359_v22 = vrot.slane %v3462_v8, 3  ;;  %v361_v28 = vrot.slane %v341_v54, 2  ;;  %v414_v53 = vld [vmem:[#allocation3 + $0x2d] sm:$0x1]  ;;  %v451_v60 = vld [vmem:[#allocation3 + $0xe] sm:$0x1] }
 0x104   :  { %v3516_v7 = vsel %vm241_vm7, %v322_v62, %v321_v45  ;;  %v356_v48 = vsel %vm229_vm3, %v355_v20, %v354_v14  ;;  %v380_v12 = vadd.f32 %v3405_v46, %v372_v0  ;;  %v382_v39 = vadd.f32 %v3405_v46, %v374_v1  ;;  %v452_v44 = vld [vmem:[#allocation3 + $0x16] sm:$0x1] }
 0x105   :  { %v358_v55 = vsel %vm232_vm4, %v357_v61, %v356_v48  ;;  %v363_v43 = vrot.slane %v342_v24, 1  ;;  %v392_v50 = vrot.slane %v3418_v16, 7  ;;  %v394_v8 = vrot.slane %v3465_v10, 6 }
 0x106   :  { %v360_v37 = vsel %vm235_vm5, %v359_v22, %v358_v55  ;;  %v383_v38 = vadd.f32 %v3405_v46, %v375_v33  ;;  %v396_v49 = vrot.slane %v3448_v56, 5  ;;  %v398_v51 = vrot.slane %v380_v12, 4  ;;  %v454_v33 = vld [vmem:[#allocation3 + $0x26] sm:$0x1] }
 0x107   :  { %v362_v47 = vsel %vm238_vm6, %v361_v28, %v360_v37  ;;  %v393_v26 = vsel %vm223_vm1, %v392_v50, %v3437_v42  ;;  %v400_v54 = vrot.slane %v3471_v32, 3  ;;  %v402_v16 = vrot.slane %v382_v39, 2  ;;  %v450_v32 = vld [vmem:[#allocation3 + $0x6] sm:$0x1]  ;;  %v453_v28 = vld [vmem:[#allocation3 + $0x1e] sm:$0x1] }
 0x108   :  { %v3532_v10 = vsel %vm241_vm7, %v363_v43, %v362_v47  ;;  %v395_v40 = vsel %vm226_vm2, %v394_v8, %v393_v26  ;;  %v419_v62 = vadd.f32 %v3405_v46, %v411_v41  ;;  %v420_v56 = vadd.f32 %v3405_v46, %v412_v36  ;;  %v456_v36 = vld [vmem:[#allocation3 + $0x36] sm:$0x1]  ;;  %v455_v43 = vld [vmem:[#allocation3 + $0x2e] sm:$0x1]  ;;  %v457_v37 = vld [vmem:[#allocation3 + $0x3e] sm:$0x1] }
 0x109   :  { %v397_v58 = vsel %vm229_vm3, %v396_v49, %v395_v40  ;;  %v421_v4 = vadd.f32 %v3405_v46, %v413_v30  ;;  %v422_v24 = vadd.f32 %v3405_v46, %v414_v53  ;;  %v423_v42 = vadd.f32 %v3405_v46, %v415_v59  ;;  %v491_v26 = vld [vmem:[#allocation3 + $0x7] sm:$0x1] }
 0x10a   :  { %v399_v61 = vsel %vm232_vm4, %v398_v51, %v397_v58  ;;  %v404_v0 = vrot.slane %v383_v38, 1  ;;  %v433_v1 = vrot.slane %v3421_v18, 7  ;;  %v435_v3 = vrot.slane %v419_v62, 6  ;;  %v494_v58 = vld [vmem:[#allocation3 + $0x1f] sm:$0x1] }
 0x10b   :  { %v401_v20 = vsel %vm235_vm5, %v400_v54, %v399_v61  ;;  %v424_v45 = vadd.f32 %v3405_v46, %v416_v52  ;;  %v437_v14 = vrot.slane %v420_v56, 5  ;;  %v439_v22 = vrot.slane %v421_v4, 4  ;;  %v492_v54 = vld [vmem:[#allocation3 + $0xf] sm:$0x1]  ;;  %v493_v56 = vld [vmem:[#allocation3 + $0x17] sm:$0x1] }
 0x10c   :  { %v403_v48 = vsel %vm238_vm6, %v402_v16, %v401_v20  ;;  %v434_v12 = vsel %vm223_vm1, %v433_v1, %v3451_v57  ;;  %v441_v39 = vrot.slane %v422_v24, 3  ;;  %v443_v41 = vrot.slane %v423_v42, 2  ;;  %v497_v61 = vld [vmem:[#allocation3 + $0x37] sm:$0x1] }
 0x10d   :  { %v3549_v18 = vsel %vm241_vm7, %v404_v0, %v403_v48  ;;  %v436_v55 = vsel %vm226_vm2, %v435_v3, %v434_v12  ;;  %v458_v50 = vadd.f32 %v3405_v46, %v450_v32  ;;  %v459_v8 = vadd.f32 %v3405_v46, %v451_v60  ;;  %v495_v60 = vld [vmem:[#allocation3 + $0x27] sm:$0x1]  ;;  %v498_v12 = vld [vmem:[#allocation3 + $0x3f] sm:$0x1] }
 0x10e   :  { %v438_v30 = vsel %vm229_vm3, %v437_v14, %v436_v55  ;;  %v460_v38 = vadd.f32 %v3405_v46, %v452_v44  ;;  %v461_v57 = vadd.f32 %v3405_v46, %v453_v28  ;;  %v462_v49 = vadd.f32 %v3405_v46, %v454_v33  ;;  %v496_v44 = vld [vmem:[#allocation3 + $0x2f] sm:$0x1] }
 0x10f   :  { %v3558_v51 = vpop.eup %3043  ;;  %v440_v53 = vsel %vm232_vm4, %v439_v22, %v438_v30  ;;  %v445_v59 = vrot.slane %v424_v45, 1  ;;  %v464_v47 = vadd.f32 %v3405_v46, %v456_v36  ;;  %v463_v40 = vadd.f32 %v3405_v46, %v455_v43 }
 0x110   :  { %2470 = vmatmul.mubr.f32.vlgmr.msra.gmra.mxu0 %v3558_v51  ;;  %v442_v16 = vsel %vm235_vm5, %v441_v39, %v440_v53  ;;  %v474_v52 = vrot.slane %v459_v8, 7  ;;  %v476_v62 = vrot.slane %v460_v38, 6  ;;  %v465_v24 = vadd.f32 %v3405_v46, %v457_v37 }
 0x111   :  { %2508 = vmatpush3.msra.mxu0 %v3161_v5  ;;  %2539 = vmatprep.mubr.msk.f32.mxu0 %vm3092_vm0, %v3091_v2  ;;  %v444_v4 = vsel %vm238_vm6, %v443_v41, %v442_v16  ;;  %v478_v42 = vrot.slane %v461_v57, 5  ;;  %v480_v32 = vrot.slane %v462_v49, 4  ;;  %v484_v3 = vrot.slane %v464_v47, 2 }
 0x112   :  { %2509 = vmatprep.subr.mxu0 %v3091_v2  ;;  %v3572_v0 = vsel %vm241_vm7, %v445_v59, %v444_v4  ;;  %v475_v1 = vsel %vm223_vm1, %v474_v52, %v458_v50  ;;  %v499_v20 = vadd.f32 %v3405_v46, %v491_v26  ;;  %v500_v14 = vadd.f32 %v3405_v46, %v492_v54 }
 0x113   :  { %2510 = vmatpush3.msra.mxu0 %v3167_v6  ;;  %v477_v45 = vsel %vm226_vm2, %v476_v62, %v475_v1  ;;  %v501_v22 = vadd.f32 %v3405_v46, %v493_v56  ;;  %v502_v28 = vadd.f32 %v3405_v46, %v494_v58  ;;  %v482_v48 = vrot.slane %v463_v40, 3  ;;  %v3086_v1 = vld [vmem:[%s4325_s2 + $0x20] sm:$0xff] }
 0x114   :  { %2511 = vmatprep.subr.mxu0 %v3091_v2  ;;  %v479_v33 = vsel %vm229_vm3, %v478_v42, %v477_v45  ;;  %v503_v39 = vadd.f32 %v3405_v46, %v495_v60  ;;  %v505_v41 = vadd.f32 %v3405_v46, %v497_v61  ;;  %v504_v55 = vadd.f32 %v3405_v46, %v496_v44  ;;  %v3698_v60 = vld [vmem:[%s4325_s2 + $0x60] sm:$0xff]  ;;  %v3085_v61 = vld [vmem:[%s4325_s2 + $0x28] sm:$0xff] }
 0x115   :  { %2512 = vmatpush3.msra.mxu0 %v3180_v9  ;;  %v481_v36 = vsel %vm232_vm4, %v480_v32, %v479_v33  ;;  %v515_v43 = vrot.slane %v500_v14, 7  ;;  %v517_v50 = vrot.slane %v501_v22, 6  ;;  %v486_v30 = vrot.slane %v465_v24, 1  ;;  %v3691_v32 = vld [vmem:[%s4325_s2 + $0x68] sm:$0xff] }
 0x116   :  { %2513 = vmatprep.subr.mxu0 %v3091_v2  ;;  %v483_v8 = vsel %vm235_vm5, %v482_v48, %v481_v36  ;;  %v521_v37 = vrot.slane %v503_v39, 4  ;;  %v506_v57 = vadd.f32 %v3405_v46, %v498_v12  ;;  %v519_v53 = vrot.slane %v502_v28, 5  ;;  %v1161_v12 = vld [vmem:[%s4328_s4 + $0x70] sm:$0xff]  ;;  %v1160_v39 = vld [vmem:[%s4328_s4 + $0x68] sm:$0xff] }
 0x117   :  { %2514 = vmatpush3.msra.mxu0 %v3189_v11  ;;  %v485_v38 = vsel %vm238_vm6, %v484_v3, %v483_v8  ;;  %v516_v49 = vsel %vm223_vm1, %v515_v43, %v499_v20  ;;  %v525_v26 = vrot.slane %v505_v41, 2  ;;  %v523_v16 = vrot.slane %v504_v55, 3  ;;  %v3087_v3 = vld [vmem:[%s4325_s2 + $0x18] sm:$0xff]  ;;  %v1156_v36 = vld [vmem:[%s4328_s4 + $0x48] sm:$0xff]  ;;  %v1155_v55 = vld [vmem:[%s4328_s4 + $0x40] sm:$0xff] }
 0x118   :  { %2515 = vmatprep.subr.mxu0 %v3091_v2  ;;  %v3596_v59 = vsel %vm241_vm7, %v486_v30, %v485_v38  ;;  %v518_v47 = vsel %vm226_vm2, %v517_v50, %v516_v49  ;;  %v527_v52 = vrot.slane %v506_v57, 1  ;;  %v1158_v41 = vld [vmem:[%s4328_s4 + $0x58] sm:$0xff]  ;;  %v1153_v50 = vld [vmem:[%s4328_s4 + $0x30] sm:$0xff]  ;;  %v1152_v8 = vld [vmem:[%s4328_s4 + $0x28] sm:$0xff] }
 0x119   :  { %2516 = vmatpush3.msra.mxu0 %v3199_v13  ;;  %v520_v54 = vsel %vm229_vm3, %v519_v53, %v518_v47  ;;  %v1154_v43 = vld [vmem:[%s4328_s4 + $0x38] sm:$0xff]  ;;  %v1151_v30 = vld [vmem:[%s4328_s4 + $0x20] sm:$0xff]  ;;  %v1149_v38 = vld [vmem:[%s4328_s4 + $0x10] sm:$0xff] }
 0x11a   :  { %2517 = vmatprep.subr.mxu0 %v3091_v2  ;;  %v522_v46 = vsel %vm232_vm4, %v521_v37, %v520_v54  ;;  %v1150_v37 = vld [vmem:[%s4328_s4 + $0x18] sm:$0xff]  ;;  %v1148_v57 = vld [vmem:[%s4328_s4 + $0x8] sm:$0xff]  ;;  %v1147_v49 = vld [vmem:[%s4328_s4] sm:$0xff] }
 0x11b   :  { %2518 = vmatpush3.msra.mxu0 %v3209_v15  ;;  %v524_v40 = vsel %vm235_vm5, %v523_v16, %v522_v46  ;;  %v3874_v53 = vld [vmem:[%s4329_s5 + $0x78] sm:$0xff]  ;;  %v3880_v47 = vld [vmem:[%s4329_s5 + $0x70] sm:$0xff]  ;;  %v3894_v54 = vld [vmem:[%s4329_s5 + $0x60] sm:$0xff] }
 0x11c   :  { %2519 = vmatprep.subr.mxu0 %v3091_v2  ;;  %v526_v62 = vsel %vm238_vm6, %v525_v26, %v524_v40  ;;  %v3887_v26 = vld [vmem:[%s4329_s5 + $0x68] sm:$0xff]  ;;  %v3901_v16 = vld [vmem:[%s4329_s5 + $0x58] sm:$0xff]  ;;  %v3908_v46 = vld [vmem:[%s4329_s5 + $0x50] sm:$0xff] }
 0x11d   :  { %2520 = vmatpush3.msra.mxu0 %v3219_v17  ;;  %v3609_v56 = vsel %vm241_vm7, %v527_v52, %v526_v62  ;;  %v3915_v40 = vld [vmem:[%s4329_s5 + $0x48] sm:$0xff]  ;;  %v3923_v52 = vld [vmem:[%s4329_s5 + $0x40] sm:$0xff]  ;;  %v3929_v62 = vld [vmem:[%s4329_s5 + $0x38] sm:$0xff] }
 0x11e   :  { %2521 = vmatprep.subr.mxu0 %v3091_v2 }
 0x11f   :  { %2522 = vmatpush3.msra.mxu0 %v3229_v19 }
 0x120   :  { %2523 = vmatprep.subr.mxu0 %v3091_v2 }
 0x121   :  { %2524 = vmatpush3.msra.mxu0 %v3239_v21 }
 0x122   :  { %2525 = vmatprep.subr.mxu0 %v3091_v2 }
 0x123   :  { %2526 = vmatpush3.msra.mxu0 %v3249_v23 }
 0x124   :  { %2527 = vmatprep.subr.mxu0 %v3091_v2 }
 0x125   :  { %2528 = vmatpush3.msra.mxu0 %v3259_v25 }
 0x126   :  { %2529 = vmatprep.subr.mxu0 %v3091_v2 }
 0x127   :  { %2530 = vmatpush3.msra.mxu0 %v3269_v27 }
 0x128   :  { %2531 = vmatprep.subr.mxu0 %v3091_v2 }
 0x129   :  { %2532 = vmatpush3.msra.mxu0 %v3279_v29 }
 0x12a   :  { %2533 = vmatprep.subr.mxu0 %v3091_v2 }
 0x12b   :  { %2534 = vmatpush3.msra.mxu0 %v3289_v31 }
 0x12c   :  { %2535 = vmatprep.subr.mxu0 %v3091_v2 }
 0x12d   :  { %2536 = vmatpush3.msra.mxu0 %v3302_v34 }
 0x12e   :  { %2537 = vmatprep.subr.mxu0 %v3091_v2 }
 0x12f   :  { %2538 = vmatpush3.msra.mxu0 %v3309_v35 }
 0x130   :  { %2577 = vmatprep.subr.mxu0 %v3091_v2 }
 0x1d0   :  { %v676_v58 = vpop.f32.mrf.mxu0 }
 0x1d1   :  { %v680_v4 = vadd.f32 %v676_v58, %v3498_v63  ;;  %v3675_v63 = vld [vmem:[%s4325_s2 + $0x78] sm:$0xff]  ;;  %v3936_v58 = vld [vmem:[%s4329_s5 + $0x30] sm:$0xff] }
 0x1d2   :  { %v2471_v24 = vpop.f32.mrf.mxu0 }
 0x1d3   :  { %3045 = vtanh.f32 %v680_v4  ;;  %v3943_v4 = vld [vmem:[%s4329_s5 + $0x28] sm:$0xff]  ;;  %v3950_v24 = vld [vmem:[%s4329_s5 + $0x20] sm:$0xff] }
 0x1e0   :  { %v3631_v42 = vpop.eup %3045 }
 0x1e1   :  { %2505 = vmatmul.mubr.f32.vlgmr.msra.gmra.mxu1 %v3631_v42 }
 0x1e2   :  { %2543 = vmatpush3.msra.mxu1 %v3161_v5  ;;  %2574 = vmatprep.mubr.msk.f32.mxu1 %vm3092_vm0, %v3091_v2 }
 0x1e3   :  { %2544 = vmatprep.subr.mxu1 %v3091_v2 }
 0x1e4   :  { %2545 = vmatpush3.msra.mxu1 %v3167_v6 }
 0x1e5   :  { %2546 = vmatprep.subr.mxu1 %v3091_v2 }
 0x1e6   :  { %2547 = vmatpush3.msra.mxu1 %v3180_v9 }
 0x1e7   :  { %2548 = vmatprep.subr.mxu1 %v3091_v2 }
 0x1e8   :  { %2549 = vmatpush3.msra.mxu1 %v3189_v11 }
 0x1e9   :  { %2550 = vmatprep.subr.mxu1 %v3091_v2 }
 0x1ea   :  { %2551 = vmatpush3.msra.mxu1 %v3199_v13 }
 0x1eb   :  { %2552 = vmatprep.subr.mxu1 %v3091_v2 }
 0x1ec   :  { %2553 = vmatpush3.msra.mxu1 %v3209_v15 }
 0x1ed   :  { %2554 = vmatprep.subr.mxu1 %v3091_v2 }
 0x1ee   :  { %2555 = vmatpush3.msra.mxu1 %v3219_v17 }
 0x1ef   :  { %2556 = vmatprep.subr.mxu1 %v3091_v2 }
 0x1f0   :  { %2557 = vmatpush3.msra.mxu1 %v3229_v19 }
 0x1f1   :  { %2558 = vmatprep.subr.mxu1 %v3091_v2 }
 0x1f2   :  { %2559 = vmatpush3.msra.mxu1 %v3239_v21 }
 0x1f3   :  { %2560 = vmatprep.subr.mxu1 %v3091_v2 }
 0x1f4   :  { %2561 = vmatpush3.msra.mxu1 %v3249_v23 }
 0x1f5   :  { %2562 = vmatprep.subr.mxu1 %v3091_v2 }
 0x1f6   :  { %2563 = vmatpush3.msra.mxu1 %v3259_v25 }
 0x1f7   :  { %2564 = vmatprep.subr.mxu1 %v3091_v2 }
 0x1f8   :  { %2565 = vmatpush3.msra.mxu1 %v3269_v27 }
 0x1f9   :  { %2566 = vmatprep.subr.mxu1 %v3091_v2 }
 0x1fa   :  { %2567 = vmatpush3.msra.mxu1 %v3279_v29 }
 0x1fb   :  { %2568 = vmatprep.subr.mxu1 %v3091_v2 }
 0x1fc   :  { %2569 = vmatpush3.msra.mxu1 %v3289_v31 }
 0x1fd   :  { %2570 = vmatprep.subr.mxu1 %v3091_v2 }
 0x1fe   :  { %2571 = vmatpush3.msra.mxu1 %v3302_v34 }
 0x1ff   :  { %2572 = vmatprep.subr.mxu1 %v3091_v2 }
 0x200   :  { %2573 = vmatpush3.msra.mxu1 %v3309_v35 }
 0x201   :  { %2612 = vmatprep.subr.mxu1 %v3091_v2 }
 0x2a1   :  { %v753_v5 = vpop.f32.mrf.mxu1 }
 0x2a2   :  { %v757_v6 = vadd.f32 %v753_v5, %v3516_v7  ;;  %v3684_v7 = vld [vmem:[%s4325_s2 + $0x70] sm:$0xff] }
 0x2a3   :  { %v2506_v9 = vpop.f32.mrf.mxu1  ;;  %v3964_v5 = vld [vmem:[%s4329_s5 + $0x10] sm:$0xff] }
 0x2a4   :  { %3047 = vtanh.f32 %v757_v6  ;;  %v3971_v6 = vld [vmem:[%s4329_s5 + $0x8] sm:$0xff]  ;;  %v3978_v9 = vld [vmem:[%s4329_s5] sm:$0xff] }
 0x2b1   :  { %v3669_v11 = vpop.eup %3047 }
 0x2b2   :  { %2540 = vmatmul.mubr.f32.vlgmr.msra.gmra.mxu0 %v3669_v11 }
 0x2b3   :  { %2578 = vmatpush3.msra.mxu0 %v3675_v63  ;;  %2609 = vmatprep.mubr.msk.f32.mxu0 %vm3092_vm0, %v3091_v2 }
 0x2b4   :  { %2579 = vmatprep.subr.mxu0 %v3091_v2 }
 0x2b5   :  { %2580 = vmatpush3.msra.mxu0 %v3684_v7 }
 0x2b6   :  { %2581 = vmatprep.subr.mxu0 %v3091_v2 }
 0x2b7   :  { %2582 = vmatpush3.msra.mxu0 %v3691_v32 }
 0x2b8   :  { %2583 = vmatprep.subr.mxu0 %v3091_v2 }
 0x2b9   :  { %2584 = vmatpush3.msra.mxu0 %v3698_v60 }
 0x2ba   :  { %2585 = vmatprep.subr.mxu0 %v3091_v2 }
 0x2bb   :  { %2586 = vmatpush3.msra.mxu0 %v3199_v13 }
 0x2bc   :  { %2587 = vmatprep.subr.mxu0 %v3091_v2 }
 0x2bd   :  { %2588 = vmatpush3.msra.mxu0 %v3209_v15 }
 0x2be   :  { %2589 = vmatprep.subr.mxu0 %v3091_v2 }
 0x2bf   :  { %2590 = vmatpush3.msra.mxu0 %v3219_v17 }
 0x2c0   :  { %2591 = vmatprep.subr.mxu0 %v3091_v2 }
 0x2c1   :  { %2592 = vmatpush3.msra.mxu0 %v3229_v19 }
 0x2c2   :  { %2593 = vmatprep.subr.mxu0 %v3091_v2 }
 0x2c3   :  { %2594 = vmatpush3.msra.mxu0 %v3239_v21  ;;  %v3079_v21 = vld [vmem:[%s4325_s2 + $0x58] sm:$0xff] }
 0x2c4   :  { %2595 = vmatprep.subr.mxu0 %v3091_v2 }
 0x2c5   :  { %2596 = vmatpush3.msra.mxu0 %v3249_v23  ;;  %v3080_v23 = vld [vmem:[%s4325_s2 + $0x50] sm:$0xff] }
 0x2c6   :  { %2597 = vmatprep.subr.mxu0 %v3091_v2 }
 0x2c7   :  { %2598 = vmatpush3.msra.mxu0 %v3259_v25  ;;  %v3081_v25 = vld [vmem:[%s4325_s2 + $0x48] sm:$0xff] }
 0x2c8   :  { %2599 = vmatprep.subr.mxu0 %v3091_v2 }
 0x2c9   :  { %2600 = vmatpush3.msra.mxu0 %v3269_v27  ;;  %v3082_v27 = vld [vmem:[%s4325_s2 + $0x40] sm:$0xff] }
 0x2ca   :  { %2601 = vmatprep.subr.mxu0 %v3091_v2 }
 0x2cb   :  { %2602 = vmatpush3.msra.mxu0 %v3279_v29  ;;  %v3083_v29 = vld [vmem:[%s4325_s2 + $0x38] sm:$0xff] }
 0x2cc   :  { %2603 = vmatprep.subr.mxu0 %v3091_v2 }
 0x2cd   :  { %2604 = vmatpush3.msra.mxu0 %v3289_v31 }
 0x2ce   :  { %2605 = vmatprep.subr.mxu0 %v3091_v2 }
 0x2cf   :  { %2606 = vmatpush3.msra.mxu0 %v3302_v34 }
 0x2d0   :  { %2607 = vmatprep.subr.mxu0 %v3091_v2 }
 0x2d1   :  { %2608 = vmatpush3.msra.mxu0 %v3309_v35 }
 0x2d2   :  { %2647 = vmatprep.subr.mxu0 %v3091_v2 }
 0x372   :  { %v830_v13 = vpop.f32.mrf.mxu0 }
 0x373   :  { %v834_v15 = vadd.f32 %v830_v13, %v3532_v10  ;;  %v3084_v10 = vld [vmem:[%s4325_s2 + $0x30] sm:$0xff] }
 0x374   :  { %v2541_v17 = vpop.f32.mrf.mxu0 }
 0x375   :  { %3049 = vtanh.f32 %v834_v15 }
 0x382   :  { %v3727_v19 = vpop.eup %3049 }
 0x383   :  { %2575 = vmatmul.mubr.f32.vlgmr.msra.gmra.mxu1 %v3727_v19 }
 0x384   :  { %2613 = vmatpush3.msra.mxu1 %v3675_v63  ;;  %2644 = vmatprep.mubr.msk.f32.mxu1 %vm3092_vm0, %v3091_v2 }
 0x385   :  { %2614 = vmatprep.subr.mxu1 %v3091_v2 }
 0x386   :  { %2615 = vmatpush3.msra.mxu1 %v3684_v7 }
 0x387   :  { %2616 = vmatprep.subr.mxu1 %v3091_v2 }
 0x388   :  { %2617 = vmatpush3.msra.mxu1 %v3691_v32 }
 0x389   :  { %2618 = vmatprep.subr.mxu1 %v3091_v2 }
 0x38a   :  { %2619 = vmatpush3.msra.mxu1 %v3698_v60 }
 0x38b   :  { %2620 = vmatprep.subr.mxu1 %v3091_v2 }
 0x38c   :  { %2621 = vmatpush3.msra.mxu1 %v3079_v21 }
 0x38d   :  { %2622 = vmatprep.subr.mxu1 %v3091_v2 }
 0x38e   :  { %2623 = vmatpush3.msra.mxu1 %v3080_v23 }
 0x38f   :  { %2624 = vmatprep.subr.mxu1 %v3091_v2 }
 0x390   :  { %2625 = vmatpush3.msra.mxu1 %v3081_v25 }
 0x391   :  { %2626 = vmatprep.subr.mxu1 %v3091_v2 }
 0x392   :  { %2627 = vmatpush3.msra.mxu1 %v3082_v27 }
 0x393   :  { %2628 = vmatprep.subr.mxu1 %v3091_v2 }
 0x394   :  { %2629 = vmatpush3.msra.mxu1 %v3083_v29 }
 0x395   :  { %2630 = vmatprep.subr.mxu1 %v3091_v2 }
 0x396   :  { %2631 = vmatpush3.msra.mxu1 %v3084_v10 }
 0x397   :  { %2632 = vmatprep.subr.mxu1 %v3091_v2 }
 0x398   :  { %2633 = vmatpush3.msra.mxu1 %v3085_v61 }
 0x399   :  { %2634 = vmatprep.subr.mxu1 %v3091_v2 }
 0x39a   :  { %2635 = vmatpush3.msra.mxu1 %v3086_v1 }
 0x39b   :  { %2636 = vmatprep.subr.mxu1 %v3091_v2 }
 0x39c   :  { %2637 = vmatpush3.msra.mxu1 %v3087_v3 }
 0x39d   :  { %2638 = vmatprep.subr.mxu1 %v3091_v2 }
 0x39e   :  { %2639 = vmatpush3.msra.mxu1 %v3289_v31  ;;  %v3088_v31 = vld [vmem:[%s4325_s2 + $0x10] sm:$0xff] }
 0x39f   :  { %2640 = vmatprep.subr.mxu1 %v3091_v2 }
 0x3a0   :  { %2641 = vmatpush3.msra.mxu1 %v3302_v34  ;;  %v3089_v34 = vld [vmem:[%s4325_s2 + $0x8] sm:$0xff] }
 0x3a1   :  { %2642 = vmatprep.subr.mxu1 %v3091_v2 }
 0x3a2   :  { %2643 = vmatpush3.msra.mxu1 %v3309_v35  ;;  %v3090_v35 = vld [vmem:[%s4325_s2] sm:$0xff] }
 0x443   :  { %v907_v44 = vpop.f32.mrf.mxu1 }
 0x444   :  { %v911_v20 = vadd.f32 %v907_v44, %v3549_v18  ;;  %v1162_v18 = vld [vmem:[%s4328_s4 + $0x78] sm:$0xff] }
 0x445   :  { %v2576_v45 = vpop.f32.mrf.mxu1  ;;  %2682 = vmatprep.subr.mxu1 %v1162_v18 }
 0x446   :  { %3051 = vtanh.f32 %v911_v20 }
 0x453   :  { %v3782_v14 = vpop.eup %3051 }
 0x454   :  { %2610 = vmatmul.mubr.f32.vlgmr.msra.gmra.mxu0 %v3782_v14 }
 0x455   :  { %2648 = vmatpush3.msra.mxu0 %v3675_v63  ;;  %2679 = vmatprep.mubr.msk.f32.mxu0 %vm3092_vm0, %v3091_v2 }
 0x456   :  { %2649 = vmatprep.subr.mxu0 %v3091_v2 }
 0x457   :  { %2650 = vmatpush3.msra.mxu0 %v3684_v7 }
 0x458   :  { %2651 = vmatprep.subr.mxu0 %v3091_v2 }
 0x459   :  { %2652 = vmatpush3.msra.mxu0 %v3691_v32 }
 0x45a   :  { %2653 = vmatprep.subr.mxu0 %v3091_v2 }
 0x45b   :  { %2654 = vmatpush3.msra.mxu0 %v3698_v60 }
 0x45c   :  { %2655 = vmatprep.subr.mxu0 %v3091_v2 }
 0x45d   :  { %2656 = vmatpush3.msra.mxu0 %v3079_v21  ;;  %v4059_v21 = vld [vmem:[%s4330_s6] ss:$0 sm:$0xff] }
 0x45e   :  { %2657 = vmatprep.subr.mxu0 %v3091_v2 }
 0x45f   :  { %2658 = vmatpush3.msra.mxu0 %v3080_v23 }
 0x460   :  { %2659 = vmatprep.subr.mxu0 %v3091_v2 }
 0x461   :  { %2660 = vmatpush3.msra.mxu0 %v3081_v25 }
 0x462   :  { %2661 = vmatprep.subr.mxu0 %v3091_v2 }
 0x463   :  { %2662 = vmatpush3.msra.mxu0 %v3082_v27 }
 0x464   :  { %2663 = vmatprep.subr.mxu0 %v3091_v2 }
 0x465   :  { %2664 = vmatpush3.msra.mxu0 %v3083_v29 }
 0x466   :  { %2665 = vmatprep.subr.mxu0 %v3091_v2 }
 0x467   :  { %2666 = vmatpush3.msra.mxu0 %v3084_v10 }
 0x468   :  { %2667 = vmatprep.subr.mxu0 %v3091_v2 }
 0x469   :  { %2668 = vmatpush3.msra.mxu0 %v3085_v61 }
 0x46a   :  { %2669 = vmatprep.subr.mxu0 %v3091_v2 }
 0x46b   :  { %2670 = vmatpush3.msra.mxu0 %v3086_v1 }
 0x46c   :  { %2671 = vmatprep.subr.mxu0 %v3091_v2 }
 0x46d   :  { %2672 = vmatpush3.msra.mxu0 %v3087_v3 }
 0x46e   :  { %2673 = vmatprep.subr.mxu0 %v3091_v2 }
 0x46f   :  { %2674 = vmatpush3.msra.mxu0 %v3088_v31 }
 0x470   :  { %2675 = vmatprep.subr.mxu0 %v3091_v2 }
 0x471   :  { %2676 = vmatpush3.msra.mxu0 %v3089_v34 }
 0x472   :  { %2677 = vmatprep.subr.mxu0 %v3091_v2 }
 0x473   :  { %2678 = vmatpush3.msra.mxu0 %v3090_v35 }
 0x474   :  { %2726 = vmatprep.subr.mxu0 %v3091_v2 }
 0x514   :  { %v984_v22 = vpop.f32.mrf.mxu0 }
 0x515   :  { %v988_v28 = vadd.f32 %v984_v22, %v3572_v0  ;;  %v1159_v0 = vld [vmem:[%s4328_s4 + $0x60] sm:$0xff] }
 0x516   :  { %v2611_v33 = vpop.f32.mrf.mxu0 }
 0x517   :  { %3053 = vtanh.f32 %v988_v28 }
 0x524   :  { %v3054_v48 = vpop.eup %3053 }
 0x525   :  { %2645 = vmatmul.mubr.f32.vlgmr.msra.gmra.mxu1 %v3054_v48 }
 0x526   :  { %2683 = vmatpush3.msra.mxu1 %v1162_v18  ;;  %2714 = vmatprep.mubr.f32.mxu1 %v3558_v51  ;;  %v1157_v51 = vld [vmem:[%s4328_s4 + $0x50] sm:$0xff] }
 0x527   :  { %2684 = vmatprep.subr.mxu1 %v1161_v12 }
 0x528   :  { %2685 = vmatpush3.msra.mxu1 %v1161_v12 }
 0x529   :  { %2686 = vmatprep.subr.mxu1 %v1160_v39 }
 0x52a   :  { %2687 = vmatpush3.msra.mxu1 %v1160_v39 }
 0x52b   :  { %2688 = vmatprep.subr.mxu1 %v1159_v0 }
 0x52c   :  { %2689 = vmatpush3.msra.mxu1 %v1159_v0 }
 0x52d   :  { %2690 = vmatprep.subr.mxu1 %v1158_v41 }
 0x52e   :  { %2691 = vmatpush3.msra.mxu1 %v1158_v41 }
 0x52f   :  { %2692 = vmatprep.subr.mxu1 %v1157_v51 }
 0x530   :  { %2693 = vmatpush3.msra.mxu1 %v1157_v51 }
 0x531   :  { %2694 = vmatprep.subr.mxu1 %v1156_v36 }
 0x532   :  { %2695 = vmatpush3.msra.mxu1 %v1156_v36 }
 0x533   :  { %2696 = vmatprep.subr.mxu1 %v1155_v55 }
 0x534   :  { %2697 = vmatpush3.msra.mxu1 %v1155_v55 }
 0x535   :  { %2698 = vmatprep.subr.mxu1 %v1154_v43 }
 0x536   :  { %2699 = vmatpush3.msra.mxu1 %v1154_v43 }
 0x537   :  { %2700 = vmatprep.subr.mxu1 %v1153_v50 }
 0x538   :  { %2701 = vmatpush3.msra.mxu1 %v1153_v50 }
 0x539   :  { %2702 = vmatprep.subr.mxu1 %v1152_v8 }
 0x53a   :  { %2703 = vmatpush3.msra.mxu1 %v1152_v8 }
 0x53b   :  { %2704 = vmatprep.subr.mxu1 %v1151_v30 }
 0x53c   :  { %2705 = vmatpush3.msra.mxu1 %v1151_v30 }
 0x53d   :  { %2706 = vmatprep.subr.mxu1 %v1150_v37 }
 0x53e   :  { %2707 = vmatpush3.msra.mxu1 %v1150_v37 }
 0x53f   :  { %2708 = vmatprep.subr.mxu1 %v1149_v38 }
 0x540   :  { %2709 = vmatpush3.msra.mxu1 %v1149_v38 }
 0x541   :  { %2710 = vmatprep.subr.mxu1 %v1148_v57 }
 0x542   :  { %2711 = vmatpush3.msra.mxu1 %v1148_v57 }
 0x543   :  { %2712 = vmatprep.subr.mxu1 %v1147_v49 }
 0x544   :  { %2713 = vmatpush3.msra.mxu1 %v1147_v49 }
 0x545   :  { %2715 = vmatmul.mubr.f32.vlgmr.msra.gmra.mxu1 %v3631_v42  ;;  %2761 = vmatprep.subr.mxu1 %v3091_v2  ;;  %v3957_v42 = vld [vmem:[%s4329_s5 + $0x18] sm:$0xff] }
 0x546   :  { %2717 = vmatprep.mubr.f32.mxu1 %v3669_v11  ;;  %2762 = vmatpush3.msra.mxu1 %v3874_v53 }
 0x547   :  { %2763 = vmatprep.subr.mxu1 %v3091_v2 }
 0x548   :  { %2764 = vmatpush3.msra.mxu1 %v3880_v47 }
 0x549   :  { %2718 = vmatmul.mubr.f32.gmra.mxu1 %v3727_v19  ;;  %2765 = vmatprep.subr.mxu1 %v3091_v2 }
 0x54a   :  { %2720 = vmatprep.mubr.f32.mxu1 %v3782_v14  ;;  %2766 = vmatpush3.msra.mxu1 %v3887_v26 }
 0x54b   :  { %2767 = vmatprep.subr.mxu1 %v3091_v2 }
 0x54c   :  { %2768 = vmatpush3.msra.mxu1 %v3894_v54 }
 0x54d   :  { %2721 = vmatmul.mubr.f32.gmra.mxu1 %v3054_v48  ;;  %2769 = vmatprep.subr.mxu1 %v3091_v2 }
 0x54e   :  { %2770 = vmatpush3.msra.mxu1 %v3901_v16 }
 0x54f   :  { %2771 = vmatprep.subr.mxu1 %v3091_v2 }
 0x550   :  { %2772 = vmatpush3.msra.mxu1 %v3908_v46 }
 0x551   :  { %2773 = vmatprep.subr.mxu1 %v3091_v2 }
 0x552   :  { %2774 = vmatpush3.msra.mxu1 %v3915_v40 }
 0x553   :  { %2775 = vmatprep.subr.mxu1 %v3091_v2 }
 0x554   :  { %2776 = vmatpush3.msra.mxu1 %v3923_v52 }
 0x555   :  { %2777 = vmatprep.subr.mxu1 %v3091_v2 }
 0x556   :  { %2778 = vmatpush3.msra.mxu1 %v3929_v62 }
 0x557   :  { %2779 = vmatprep.subr.mxu1 %v3091_v2 }
 0x558   :  { %2780 = vmatpush3.msra.mxu1 %v3936_v58 }
 0x559   :  { %2781 = vmatprep.subr.mxu1 %v3091_v2 }
 0x55a   :  { %2782 = vmatpush3.msra.mxu1 %v3943_v4 }
 0x55b   :  { %2783 = vmatprep.subr.mxu1 %v3091_v2 }
 0x55c   :  { %2784 = vmatpush3.msra.mxu1 %v3950_v24 }
 0x55d   :  { %2785 = vmatprep.subr.mxu1 %v3091_v2 }
 0x55e   :  { %2786 = vmatpush3.msra.mxu1 %v3957_v42 }
 0x55f   :  { %2787 = vmatprep.subr.mxu1 %v3091_v2 }
 0x560   :  { %2788 = vmatpush3.msra.mxu1 %v3964_v5 }
 0x561   :  { %2789 = vmatprep.subr.mxu1 %v3091_v2 }
 0x562   :  { %2790 = vmatpush3.msra.mxu1 %v3971_v6 }
 0x563   :  { %2791 = vmatprep.subr.mxu1 %v3091_v2 }
 0x564   :  { %2792 = vmatpush3.msra.mxu1 %v3978_v9 }
 0x565   :  { %2831 = vmatprep.subr.mxu1 %v3091_v2 }
 0x5e5   :  { %v1061_v11 = vpop.f32.mrf.mxu1 }
 0x5e6   :  { %v1065_v63 = vadd.f32 %v1061_v11, %v3596_v59  ;;  %v1924_v11 = vld [vmem:[%s4331_s7 + $0x20] sm:$0xff] }
 0x5e7   :  { %v2646_v7 = vpop.f32.mrf.mxu1 }
 0x5e8   :  { %3055 = vtanh.f32 %v1065_v63  ;;  %v1923_v63 = vld [vmem:[%s4331_s7 + $0x18] sm:$0xff]  ;;  %v1922_v7 = vld [vmem:[%s4331_s7 + $0x10] sm:$0xff] }
 0x5f5   :  { %v3056_v32 = vpop.eup %3055 }
 0x5f6   :  { %2680 = vmatmul.mubr.f32.vlgmr.msra.gmra.mxu0 %v3056_v32  ;;  %2723 = vmatprep.mubr.f32.mxu1 %v3056_v32  ;;  %v1921_v32 = vld [vmem:[%s4331_s7 + $0x8] sm:$0xff] }
 0x5f7   :  { %2727 = vmatpush3.msra.mxu0 %v3874_v53  ;;  %2758 = vmatprep.mubr.msk.f32.mxu0 %vm3092_vm0, %v3091_v2 }
 0x5f8   :  { %2728 = vmatprep.subr.mxu0 %v3091_v2 }
 0x5f9   :  { %2729 = vmatpush3.msra.mxu0 %v3880_v47 }
 0x5fa   :  { %2730 = vmatprep.subr.mxu0 %v3091_v2 }
 0x5fb   :  { %2731 = vmatpush3.msra.mxu0 %v3887_v26 }
 0x5fc   :  { %2732 = vmatprep.subr.mxu0 %v3091_v2 }
 0x5fd   :  { %2733 = vmatpush3.msra.mxu0 %v3894_v54 }
 0x5fe   :  { %2734 = vmatprep.subr.mxu0 %v3091_v2 }
 0x5ff   :  { %2735 = vmatpush3.msra.mxu0 %v3901_v16 }
 0x600   :  { %2736 = vmatprep.subr.mxu0 %v3091_v2 }
 0x601   :  { %2737 = vmatpush3.msra.mxu0 %v3908_v46 }
 0x602   :  { %2738 = vmatprep.subr.mxu0 %v3091_v2 }
 0x603   :  { %2739 = vmatpush3.msra.mxu0 %v3915_v40 }
 0x604   :  { %2740 = vmatprep.subr.mxu0 %v3091_v2 }
 0x605   :  { %2741 = vmatpush3.msra.mxu0 %v3923_v52  ;;  %v2716_v17 = vpop.f32.mrf.mxu1 }
 0x606   :  { %2742 = vmatprep.subr.mxu0 %v3091_v2  ;;  %v1300_v45 = vadd.f32 %v2716_v17, %v4059_v21 }
 0x607   :  { %2743 = vmatpush3.msra.mxu0 %v3929_v62  ;;  %v1254_v19 = vpop.f32.mrf.mxu1 }
 0x608   :  { %2744 = vmatprep.subr.mxu0 %v3091_v2  ;;  %v1299_v23 = vadd.f32 %v4059_v21, %v1254_v19 }
 0x609   :  { %2745 = vmatpush3.msra.mxu0 %v3936_v58  ;;  %v4096_v10 = vpop.f32.mrf.mxu1 }
 0x60a   :  { %2746 = vmatprep.subr.mxu0 %v3091_v2  ;;  %v1302_v12 = vadd.f32 %v4096_v10, %v4059_v21 }
 0x60b   :  { %2747 = vmatpush3.msra.mxu0 %v3943_v4  ;;  %v1264_v61 = vpop.f32.mrf.mxu1 }
 0x60c   :  { %2748 = vmatprep.subr.mxu0 %v3091_v2  ;;  %v1301_v18 = vadd.f32 %v4059_v21, %v1264_v61 }
 0x60d   :  { %2749 = vmatpush3.msra.mxu0 %v3950_v24  ;;  %v4098_v1 = vpop.f32.mrf.mxu1 }
 0x60e   :  { %2750 = vmatprep.subr.mxu0 %v3091_v2  ;;  %v1304_v30 = vadd.f32 %v4098_v1, %v4059_v21 }
 0x60f   :  { %2751 = vmatpush3.msra.mxu0 %v3957_v42  ;;  %v4100_v3 = vpop.f32.mrf.mxu1 }
 0x610   :  { %2752 = vmatprep.subr.mxu0 %v3091_v2  ;;  %v1303_v36 = vadd.f32 %v4059_v21, %v4100_v3 }
 0x611   :  { %2753 = vmatpush3.msra.mxu0 %v3964_v5 }
 0x612   :  { %2754 = vmatprep.subr.mxu0 %v3091_v2 }
 0x613   :  { %2755 = vmatpush3.msra.mxu0 %v3971_v6 }
 0x614   :  { %2756 = vmatprep.subr.mxu0 %v3091_v2 }
 0x615   :  { %2757 = vmatpush3.msra.mxu0 %v3978_v9 }
 0x616   :  { %2759 = vmatmul.mubr.f32.vlgmr.msra.gmra.mxu0 %v3091_v2  ;;  %2796 = vmatprep.subr.mxu0 %v3091_v2 }
 0x617   :  { %2797 = vmatpush3.msra.mxu0 %v3874_v53  ;;  %2828 = vmatprep.mubr.msk.f32.mxu0 %vm3092_vm0, %v3091_v2 }
 0x618   :  { %2798 = vmatprep.subr.mxu0 %v3091_v2 }
 0x619   :  { %2799 = vmatpush3.msra.mxu0 %v3880_v47 }
 0x61a   :  { %2800 = vmatprep.subr.mxu0 %v3091_v2 }
 0x61b   :  { %2801 = vmatpush3.msra.mxu0 %v3887_v26 }
 0x61c   :  { %2802 = vmatprep.subr.mxu0 %v3091_v2 }
 0x61d   :  { %2803 = vmatpush3.msra.mxu0 %v3894_v54 }
 0x61e   :  { %2804 = vmatprep.subr.mxu0 %v3091_v2 }
 0x61f   :  { %2805 = vmatpush3.msra.mxu0 %v3901_v16 }
 0x620   :  { %2806 = vmatprep.subr.mxu0 %v3091_v2 }
 0x621   :  { %2807 = vmatpush3.msra.mxu0 %v3908_v46 }
 0x622   :  { %2808 = vmatprep.subr.mxu0 %v3091_v2 }
 0x623   :  { %2809 = vmatpush3.msra.mxu0 %v3915_v40 }
 0x624   :  { %2810 = vmatprep.subr.mxu0 %v3091_v2 }
 0x625   :  { %2811 = vmatpush3.msra.mxu0 %v3923_v52 }
 0x626   :  { %2812 = vmatprep.subr.mxu0 %v3091_v2 }
 0x627   :  { %2813 = vmatpush3.msra.mxu0 %v3929_v62 }
 0x628   :  { %2814 = vmatprep.subr.mxu0 %v3091_v2 }
 0x629   :  { %2815 = vmatpush3.msra.mxu0 %v3936_v58 }
 0x62a   :  { %2816 = vmatprep.subr.mxu0 %v3091_v2 }
 0x62b   :  { %2817 = vmatpush3.msra.mxu0 %v3943_v4 }
 0x62c   :  { %2818 = vmatprep.subr.mxu0 %v3091_v2 }
 0x62d   :  { %2819 = vmatpush3.msra.mxu0 %v3950_v24 }
 0x62e   :  { %2820 = vmatprep.subr.mxu0 %v3091_v2 }
 0x62f   :  { %2821 = vmatpush3.msra.mxu0 %v3957_v42 }
 0x630   :  { %2822 = vmatprep.subr.mxu0 %v3091_v2 }
 0x631   :  { %2823 = vmatpush3.msra.mxu0 %v3964_v5 }
 0x632   :  { %2824 = vmatprep.subr.mxu0 %v3091_v2 }
 0x633   :  { %2825 = vmatpush3.msra.mxu0 %v3971_v6 }
 0x634   :  { %2826 = vmatprep.subr.mxu0 %v3091_v2 }
 0x635   :  { %2827 = vmatpush3.msra.mxu0 %v3978_v9 }
 0x636   :  { %2866 = vmatprep.subr.mxu0 %v3091_v2 }
 0x6b6   :  { %v1138_v59 = vpop.f32.mrf.mxu0 }
 0x6b7   :  { %v1142_v60 = vadd.f32 %v1138_v59, %v3609_v56  ;;  %v1920_v59 = vld [vmem:[%s4331_s7] sm:$0xff] }
 0x6b8   :  { %v2681_v13 = vpop.f32.mrf.mxu0 }
 0x6b9   :  { %3057 = vtanh.f32 %v1142_v60 }
 0x6c6   :  { %v3058_v15 = vpop.eup %3057 }
 0x6c7   :  { %2724 = vmatmul.mubr.f32.gmra.mxu1 %v3058_v15 }
 0x6c8   :  { %2793 = vmatprep.mubr.msk.f32.mxu1 %vm3092_vm0, %v3091_v2 }
 0x6d6   :  { %v1384_v25 = vpop.f32.mrf.mxu0 }
 0x6d7   :  { %v1388_v27 = vadd.f32 %v1384_v25, %v1299_v23  ;;  %v2020_v23 = vld [vmem:[%s4332_s8] ss:$0 sm:$0xff] }
 0x6d8   :  { %v2760_v29 = vpop.f32.mrf.mxu0 }
 0x6d9   :  { %3059 = vtanh.f32 %v1388_v27 }
 0x6e6   :  { %v3060_v56 = vpop.eup %3059 }
 0x6e7   :  { %2794 = vmatmul.mubr.f32.vlgmr.msra.gmra.mxu1 %v3060_v56 }
 0x6e8   :  { %2832 = vmatpush3.msra.mxu1 %v3874_v53  ;;  %2863 = vmatprep.mubr.msk.f32.mxu1 %vm3092_vm0, %v3091_v2 }
 0x6e9   :  { %2833 = vmatprep.subr.mxu1 %v3091_v2 }
 0x6ea   :  { %2834 = vmatpush3.msra.mxu1 %v3880_v47 }
 0x6eb   :  { %2835 = vmatprep.subr.mxu1 %v3091_v2 }
 0x6ec   :  { %2836 = vmatpush3.msra.mxu1 %v3887_v26 }
 0x6ed   :  { %2837 = vmatprep.subr.mxu1 %v3091_v2 }
 0x6ee   :  { %2838 = vmatpush3.msra.mxu1 %v3894_v54 }
 0x6ef   :  { %2839 = vmatprep.subr.mxu1 %v3091_v2 }
 0x6f0   :  { %2840 = vmatpush3.msra.mxu1 %v3901_v16 }
 0x6f1   :  { %2841 = vmatprep.subr.mxu1 %v3091_v2 }
 0x6f2   :  { %2842 = vmatpush3.msra.mxu1 %v3908_v46 }
 0x6f3   :  { %2843 = vmatprep.subr.mxu1 %v3091_v2 }
 0x6f4   :  { %2844 = vmatpush3.msra.mxu1 %v3915_v40 }
 0x6f5   :  { %2845 = vmatprep.subr.mxu1 %v3091_v2 }
 0x6f6   :  { %2846 = vmatpush3.msra.mxu1 %v3923_v52 }
 0x6f7   :  { %2847 = vmatprep.subr.mxu1 %v3091_v2 }
 0x6f8   :  { %2848 = vmatpush3.msra.mxu1 %v3929_v62 }
 0x6f9   :  { %2849 = vmatprep.subr.mxu1 %v3091_v2 }
 0x6fa   :  { %2850 = vmatpush3.msra.mxu1 %v3936_v58 }
 0x6fb   :  { %2851 = vmatprep.subr.mxu1 %v3091_v2 }
 0x6fc   :  { %2852 = vmatpush3.msra.mxu1 %v3943_v4 }
 0x6fd   :  { %2853 = vmatprep.subr.mxu1 %v3091_v2 }
 0x6fe   :  { %2854 = vmatpush3.msra.mxu1 %v3950_v24 }
 0x6ff   :  { %2855 = vmatprep.subr.mxu1 %v3091_v2 }
 0x700   :  { %2856 = vmatpush3.msra.mxu1 %v3957_v42 }
 0x701   :  { %2857 = vmatprep.subr.mxu1 %v3091_v2 }
 0x702   :  { %2858 = vmatpush3.msra.mxu1 %v3964_v5 }
 0x703   :  { %2859 = vmatprep.subr.mxu1 %v3091_v2 }
 0x704   :  { %2860 = vmatpush3.msra.mxu1 %v3971_v6 }
 0x705   :  { %2861 = vmatprep.subr.mxu1 %v3091_v2 }
 0x706   :  { %2862 = vmatpush3.msra.mxu1 %v3978_v9 }
 0x707   :  { %2901 = vmatprep.subr.mxu1 %v3091_v2 }
 0x787   :  { %v4102_v44 = vpop.f32.mrf.mxu1 }
 0x788   :  { %v1306_v60 = vadd.f32 %v4102_v44, %v4059_v21 }
 0x789   :  { %v4104_v20 = vpop.f32.mrf.mxu1 }
 0x7a7   :  { %v1459_v14 = vpop.f32.mrf.mxu1 }
 0x7a8   :  { %v1463_v31 = vadd.f32 %v1459_v14, %v1300_v45 }
 0x7a9   :  { %v2795_v34 = vpop.f32.mrf.mxu1 }
 0x7aa   :  { %3061 = vtanh.f32 %v1463_v31 }
 0x7b7   :  { %v3062_v35 = vpop.eup %3061 }
 0x7b8   :  { %2829 = vmatmul.mubr.f32.vlgmr.msra.gmra.mxu0 %v3062_v35 }
 0x7b9   :  { %2867 = vmatpush3.msra.mxu0 %v3874_v53  ;;  %2898 = vmatprep.mubr.msk.f32.mxu0 %vm3092_vm0, %v3091_v2 }
 0x7ba   :  { %2868 = vmatprep.subr.mxu0 %v3091_v2 }
 0x7bb   :  { %2869 = vmatpush3.msra.mxu0 %v3880_v47 }
 0x7bc   :  { %2870 = vmatprep.subr.mxu0 %v3091_v2 }
 0x7bd   :  { %2871 = vmatpush3.msra.mxu0 %v3887_v26 }
 0x7be   :  { %2872 = vmatprep.subr.mxu0 %v3091_v2 }
 0x7bf   :  { %2873 = vmatpush3.msra.mxu0 %v3894_v54 }
 0x7c0   :  { %2874 = vmatprep.subr.mxu0 %v3091_v2 }
 0x7c1   :  { %2875 = vmatpush3.msra.mxu0 %v3901_v16 }
 0x7c2   :  { %2876 = vmatprep.subr.mxu0 %v3091_v2 }
 0x7c3   :  { %2877 = vmatpush3.msra.mxu0 %v3908_v46 }
 0x7c4   :  { %2878 = vmatprep.subr.mxu0 %v3091_v2 }
 0x7c5   :  { %2879 = vmatpush3.msra.mxu0 %v3915_v40 }
 0x7c6   :  { %2880 = vmatprep.subr.mxu0 %v3091_v2 }
 0x7c7   :  { %2881 = vmatpush3.msra.mxu0 %v3923_v52 }
 0x7c8   :  { %2882 = vmatprep.subr.mxu0 %v3091_v2 }
 0x7c9   :  { %2883 = vmatpush3.msra.mxu0 %v3929_v62 }
 0x7ca   :  { %2884 = vmatprep.subr.mxu0 %v3091_v2 }
 0x7cb   :  { %2885 = vmatpush3.msra.mxu0 %v3936_v58 }
 0x7cc   :  { %2886 = vmatprep.subr.mxu0 %v3091_v2 }
 0x7cd   :  { %2887 = vmatpush3.msra.mxu0 %v3943_v4 }
 0x7ce   :  { %2888 = vmatprep.subr.mxu0 %v3091_v2 }
 0x7cf   :  { %2889 = vmatpush3.msra.mxu0 %v3950_v24 }
 0x7d0   :  { %2890 = vmatprep.subr.mxu0 %v3091_v2 }
 0x7d1   :  { %2891 = vmatpush3.msra.mxu0 %v3957_v42 }
 0x7d2   :  { %2892 = vmatprep.subr.mxu0 %v3091_v2 }
 0x7d3   :  { %2893 = vmatpush3.msra.mxu0 %v3964_v5 }
 0x7d4   :  { %2894 = vmatprep.subr.mxu0 %v3091_v2 }
 0x7d5   :  { %2895 = vmatpush3.msra.mxu0 %v3971_v6 }
 0x7d6   :  { %2896 = vmatprep.subr.mxu0 %v3091_v2 }
 0x7d7   :  { %2897 = vmatpush3.msra.mxu0 %v3978_v9 }
 0x7d8   :  { %2936 = vmatprep.subr.mxu0 %v3091_v2 }
 0x878   :  { %v1534_v22 = vpop.f32.mrf.mxu0 }
 0x879   :  { %v1538_v28 = vadd.f32 %v1534_v22, %v1301_v18 }
 0x87a   :  { %v2830_v33 = vpop.f32.mrf.mxu0 }
 0x87b   :  { %3063 = vtanh.f32 %v1538_v28 }
 0x888   :  { %v3064_v48 = vpop.eup %3063 }
 0x889   :  { %2864 = vmatmul.mubr.f32.vlgmr.msra.gmra.mxu1 %v3064_v48 }
 0x88a   :  { %2902 = vmatpush3.msra.mxu1 %v3874_v53  ;;  %2933 = vmatprep.mubr.msk.f32.mxu1 %vm3092_vm0, %v3091_v2 }
 0x88b   :  { %2903 = vmatprep.subr.mxu1 %v3091_v2 }
 0x88c   :  { %2904 = vmatpush3.msra.mxu1 %v3880_v47 }
 0x88d   :  { %2905 = vmatprep.subr.mxu1 %v3091_v2 }
 0x88e   :  { %2906 = vmatpush3.msra.mxu1 %v3887_v26 }
 0x88f   :  { %2907 = vmatprep.subr.mxu1 %v3091_v2 }
 0x890   :  { %2908 = vmatpush3.msra.mxu1 %v3894_v54 }
 0x891   :  { %2909 = vmatprep.subr.mxu1 %v3091_v2 }
 0x892   :  { %2910 = vmatpush3.msra.mxu1 %v3901_v16 }
 0x893   :  { %2911 = vmatprep.subr.mxu1 %v3091_v2 }
 0x894   :  { %2912 = vmatpush3.msra.mxu1 %v3908_v46 }
 0x895   :  { %2913 = vmatprep.subr.mxu1 %v3091_v2 }
 0x896   :  { %2914 = vmatpush3.msra.mxu1 %v3915_v40 }
 0x897   :  { %2915 = vmatprep.subr.mxu1 %v3091_v2 }
 0x898   :  { %2916 = vmatpush3.msra.mxu1 %v3923_v52 }
 0x899   :  { %2917 = vmatprep.subr.mxu1 %v3091_v2 }
 0x89a   :  { %2918 = vmatpush3.msra.mxu1 %v3929_v62 }
 0x89b   :  { %2919 = vmatprep.subr.mxu1 %v3091_v2 }
 0x89c   :  { %2920 = vmatpush3.msra.mxu1 %v3936_v58 }
 0x89d   :  { %2921 = vmatprep.subr.mxu1 %v3091_v2 }
 0x89e   :  { %2922 = vmatpush3.msra.mxu1 %v3943_v4 }
 0x89f   :  { %2923 = vmatprep.subr.mxu1 %v3091_v2 }
 0x8a0   :  { %2924 = vmatpush3.msra.mxu1 %v3950_v24 }
 0x8a1   :  { %2925 = vmatprep.subr.mxu1 %v3091_v2 }
 0x8a2   :  { %2926 = vmatpush3.msra.mxu1 %v3957_v42 }
 0x8a3   :  { %2927 = vmatprep.subr.mxu1 %v3091_v2 }
 0x8a4   :  { %2928 = vmatpush3.msra.mxu1 %v3964_v5 }
 0x8a5   :  { %2929 = vmatprep.subr.mxu1 %v3091_v2 }
 0x8a6   :  { %2930 = vmatpush3.msra.mxu1 %v3971_v6 }
 0x8a7   :  { %2931 = vmatprep.subr.mxu1 %v3091_v2 }
 0x8a8   :  { %2932 = vmatpush3.msra.mxu1 %v3978_v9 }
 0x8a9   :  { %2971 = vmatprep.subr.mxu1 %v3091_v2 }
 0x949   :  { %v1609_v39 = vpop.f32.mrf.mxu1 }
 0x94a   :  { %v1613_v0 = vadd.f32 %v1609_v39, %v1302_v12 }
 0x94b   :  { %v2865_v41 = vpop.f32.mrf.mxu1 }
 0x94c   :  { %3065 = vtanh.f32 %v1613_v0 }
 0x959   :  { %v3066_v51 = vpop.eup %3065 }
 0x95a   :  { %2899 = vmatmul.mubr.f32.vlgmr.msra.gmra.mxu0 %v3066_v51 }
 0x95b   :  { %2937 = vmatpush3.msra.mxu0 %v3874_v53  ;;  %2968 = vmatprep.mubr.msk.f32.mxu0 %vm3092_vm0, %v3091_v2 }
 0x95c   :  { %2938 = vmatprep.subr.mxu0 %v3091_v2 }
 0x95d   :  { %2939 = vmatpush3.msra.mxu0 %v3880_v47 }
 0x95e   :  { %2940 = vmatprep.subr.mxu0 %v3091_v2 }
 0x95f   :  { %2941 = vmatpush3.msra.mxu0 %v3887_v26 }
 0x960   :  { %2942 = vmatprep.subr.mxu0 %v3091_v2 }
 0x961   :  { %2943 = vmatpush3.msra.mxu0 %v3894_v54 }
 0x962   :  { %2944 = vmatprep.subr.mxu0 %v3091_v2 }
 0x963   :  { %2945 = vmatpush3.msra.mxu0 %v3901_v16 }
 0x964   :  { %2946 = vmatprep.subr.mxu0 %v3091_v2 }
 0x965   :  { %2947 = vmatpush3.msra.mxu0 %v3908_v46 }
 0x966   :  { %2948 = vmatprep.subr.mxu0 %v3091_v2 }
 0x967   :  { %2949 = vmatpush3.msra.mxu0 %v3915_v40 }
 0x968   :  { %2950 = vmatprep.subr.mxu0 %v3091_v2 }
 0x969   :  { %2951 = vmatpush3.msra.mxu0 %v3923_v52 }
 0x96a   :  { %2952 = vmatprep.subr.mxu0 %v3091_v2 }
 0x96b   :  { %2953 = vmatpush3.msra.mxu0 %v3929_v62 }
 0x96c   :  { %2954 = vmatprep.subr.mxu0 %v3091_v2 }
 0x96d   :  { %2955 = vmatpush3.msra.mxu0 %v3936_v58 }
 0x96e   :  { %2956 = vmatprep.subr.mxu0 %v3091_v2 }
 0x96f   :  { %2957 = vmatpush3.msra.mxu0 %v3943_v4 }
 0x970   :  { %2958 = vmatprep.subr.mxu0 %v3091_v2 }
 0x971   :  { %2959 = vmatpush3.msra.mxu0 %v3950_v24 }
 0x972   :  { %2960 = vmatprep.subr.mxu0 %v3091_v2 }
 0x973   :  { %2961 = vmatpush3.msra.mxu0 %v3957_v42 }
 0x974   :  { %2962 = vmatprep.subr.mxu0 %v3091_v2 }
 0x975   :  { %2963 = vmatpush3.msra.mxu0 %v3964_v5 }
 0x976   :  { %2964 = vmatprep.subr.mxu0 %v3091_v2 }
 0x977   :  { %2965 = vmatpush3.msra.mxu0 %v3971_v6 }
 0x978   :  { %2966 = vmatprep.subr.mxu0 %v3091_v2 }
 0x979   :  { %2967 = vmatpush3.msra.mxu0 %v3978_v9 }
 0x97a   :  { %3006 = vmatprep.subr.mxu0 %v3091_v2 }
 0xa1a   :  { %v1684_v55 = vpop.f32.mrf.mxu0 }
 0xa1b   :  { %v1688_v43 = vadd.f32 %v1684_v55, %v1303_v36 }
 0xa1c   :  { %v2900_v50 = vpop.f32.mrf.mxu0 }
 0xa1d   :  { %3067 = vtanh.f32 %v1688_v43 }
 0xa2a   :  { %v3068_v8 = vpop.eup %3067 }
 0xa2b   :  { %2934 = vmatmul.mubr.f32.vlgmr.msra.gmra.mxu1 %v3068_v8 }
 0xa2c   :  { %2972 = vmatpush3.msra.mxu1 %v3874_v53  ;;  %3003 = vmatprep.mubr.msk.f32.mxu1 %vm3092_vm0, %v3091_v2  ;;  %v1935_v53 = vld [vmem:[%s4331_s7 + $0x78] sm:$0xff] }
 0xa2d   :  { %2973 = vmatprep.subr.mxu1 %v3091_v2 }
 0xa2e   :  { %2974 = vmatpush3.msra.mxu1 %v3880_v47  ;;  %v1934_v47 = vld [vmem:[%s4331_s7 + $0x70] sm:$0xff] }
 0xa2f   :  { %2975 = vmatprep.subr.mxu1 %v3091_v2 }
 0xa30   :  { %2976 = vmatpush3.msra.mxu1 %v3887_v26  ;;  %v1933_v26 = vld [vmem:[%s4331_s7 + $0x68] sm:$0xff] }
 0xa31   :  { %2977 = vmatprep.subr.mxu1 %v3091_v2 }
 0xa32   :  { %2978 = vmatpush3.msra.mxu1 %v3894_v54  ;;  %v1932_v54 = vld [vmem:[%s4331_s7 + $0x60] sm:$0xff] }
 0xa33   :  { %2979 = vmatprep.subr.mxu1 %v3091_v2 }
 0xa34   :  { %2980 = vmatpush3.msra.mxu1 %v3901_v16  ;;  %v1931_v16 = vld [vmem:[%s4331_s7 + $0x58] sm:$0xff] }
 0xa35   :  { %2981 = vmatprep.subr.mxu1 %v3091_v2 }
 0xa36   :  { %2982 = vmatpush3.msra.mxu1 %v3908_v46  ;;  %v1930_v46 = vld [vmem:[%s4331_s7 + $0x50] sm:$0xff] }
 0xa37   :  { %2983 = vmatprep.subr.mxu1 %v3091_v2 }
 0xa38   :  { %2984 = vmatpush3.msra.mxu1 %v3915_v40  ;;  %v1929_v40 = vld [vmem:[%s4331_s7 + $0x48] sm:$0xff] }
 0xa39   :  { %2985 = vmatprep.subr.mxu1 %v3091_v2 }
 0xa3a   :  { %2986 = vmatpush3.msra.mxu1 %v3923_v52  ;;  %v1305_v52 = vadd.f32 %v4059_v21, %v4104_v20 }
 0xa3b   :  { %2987 = vmatprep.subr.mxu1 %v3091_v2 }
 0xa3c   :  { %2988 = vmatpush3.msra.mxu1 %v3929_v62 }
 0xa3d   :  { %2989 = vmatprep.subr.mxu1 %v3091_v2 }
 0xa3e   :  { %2990 = vmatpush3.msra.mxu1 %v3936_v58 }
 0xa3f   :  { %2991 = vmatprep.subr.mxu1 %v3091_v2 }
 0xa40   :  { %2992 = vmatpush3.msra.mxu1 %v3943_v4 }
 0xa41   :  { %2993 = vmatprep.subr.mxu1 %v3091_v2 }
 0xa42   :  { %2994 = vmatpush3.msra.mxu1 %v3950_v24 }
 0xa43   :  { %2995 = vmatprep.subr.mxu1 %v3091_v2 }
 0xa44   :  { %2996 = vmatpush3.msra.mxu1 %v3957_v42  ;;  %v1928_v42 = vld [vmem:[%s4331_s7 + $0x40] sm:$0xff] }
 0xa45   :  { %2997 = vmatprep.subr.mxu1 %v3091_v2 }
 0xa46   :  { %2998 = vmatpush3.msra.mxu1 %v3964_v5  ;;  %v1927_v5 = vld [vmem:[%s4331_s7 + $0x38] sm:$0xff] }
 0xa47   :  { %2999 = vmatprep.subr.mxu1 %v3091_v2 }
 0xa48   :  { %3000 = vmatpush3.msra.mxu1 %v3971_v6  ;;  %v1926_v6 = vld [vmem:[%s4331_s7 + $0x30] sm:$0xff] }
 0xa49   :  { %3001 = vmatprep.subr.mxu1 %v3091_v2 }
 0xa4a   :  { %3002 = vmatpush3.msra.mxu1 %v3978_v9  ;;  %v1925_v9 = vld [vmem:[%s4331_s7 + $0x28] sm:$0xff] }
 0xaeb   :  { %v1759_v37 = vpop.f32.mrf.mxu1 }
 0xaec   :  { %v1763_v38 = vadd.f32 %v1759_v37, %v1304_v30 }
 0xaed   :  { %v2935_v57 = vpop.f32.mrf.mxu1 }
 0xaee   :  { %3069 = vtanh.f32 %v1763_v38 }
 0xafb   :  { %v3070_v49 = vpop.eup %3069 }
 0xafc   :  { %2969 = vmatmul.mubr.f32.vlgmr.msra.gmra.mxu0 %v3070_v49 }
 0xafd   :  { %3038 = vmatprep.mubr.msk.f32.mxu0 %vm3092_vm0, %v3091_v2  ;;  %3007 = vmatpush3.msra.mxu0 %v1935_v53 }
 0xafe   :  { %3008 = vmatprep.subr.mxu0 %v3091_v2 }
 0xaff   :  { %3009 = vmatpush3.msra.mxu0 %v1934_v47 }
 0xb00   :  { %3010 = vmatprep.subr.mxu0 %v3091_v2 }
 0xb01   :  { %3011 = vmatpush3.msra.mxu0 %v1933_v26 }
 0xb02   :  { %3012 = vmatprep.subr.mxu0 %v3091_v2 }
 0xb03   :  { %3013 = vmatpush3.msra.mxu0 %v1932_v54 }
 0xb04   :  { %3014 = vmatprep.subr.mxu0 %v3091_v2 }
 0xb05   :  { %3015 = vmatpush3.msra.mxu0 %v1931_v16 }
 0xb06   :  { %3016 = vmatprep.subr.mxu0 %v3091_v2 }
 0xb07   :  { %3017 = vmatpush3.msra.mxu0 %v1930_v46 }
 0xb08   :  { %3018 = vmatprep.subr.mxu0 %v3091_v2 }
 0xb09   :  { %3019 = vmatpush3.msra.mxu0 %v1929_v40 }
 0xb0a   :  { %3020 = vmatprep.subr.mxu0 %v3091_v2 }
 0xb0b   :  { %3021 = vmatpush3.msra.mxu0 %v1928_v42 }
 0xb0c   :  { %3022 = vmatprep.subr.mxu0 %v3091_v2 }
 0xb0d   :  { %3023 = vmatpush3.msra.mxu0 %v1927_v5 }
 0xb0e   :  { %3024 = vmatprep.subr.mxu0 %v3091_v2 }
 0xb0f   :  { %3025 = vmatpush3.msra.mxu0 %v1926_v6 }
 0xb10   :  { %3026 = vmatprep.subr.mxu0 %v3091_v2 }
 0xb11   :  { %3027 = vmatpush3.msra.mxu0 %v1925_v9 }
 0xb12   :  { %3028 = vmatprep.subr.mxu0 %v3091_v2 }
 0xb13   :  { %3029 = vmatpush3.msra.mxu0 %v1924_v11 }
 0xb14   :  { %3030 = vmatprep.subr.mxu0 %v3091_v2 }
 0xb15   :  { %3031 = vmatpush3.msra.mxu0 %v1923_v63 }
 0xb16   :  { %3032 = vmatprep.subr.mxu0 %v3091_v2 }
 0xb17   :  { %3033 = vmatpush3.msra.mxu0 %v1922_v7 }
 0xb18   :  { %3034 = vmatprep.subr.mxu0 %v3091_v2 }
 0xb19   :  { %3035 = vmatpush3.msra.mxu0 %v1921_v32 }
 0xb1a   :  { %3036 = vmatprep.subr.mxu0 %v3091_v2 }
 0xb1b   :  { %3037 = vmatpush3.msra.mxu0 %v1920_v59 }
 0xbbc   :  { %v1834_v62 = vpop.f32.mrf.mxu0 }
 0xbbd   :  { %v1838_v58 = vadd.f32 %v1834_v62, %v1305_v52 }
 0xbbe   :  { %v2970_v4 = vpop.f32.mrf.mxu0 }
 0xbbf   :  { %3071 = vtanh.f32 %v1838_v58 }
 0xbcc   :  { %v3072_v24 = vpop.eup %3071 }
 0xbcd   :  { %3004 = vmatmul.mubr.f32.vlgmr.msra.gmra.mxu1 %v3072_v24 }
 0xc8d   :  { %v1909_v13 = vpop.f32.mrf.mxu1 }
 0xc8e   :  { %v1913_v15 = vadd.f32 %v1909_v13, %v1306_v60 }
 0xc8f   :  { %v3005_v17 = vpop.f32.mrf.mxu1 }
 0xc90   :  { %3073 = vtanh.f32 %v1913_v15 }
 0xc9d   :  { %v3074_v19 = vpop.eup %3073 }
 0xc9e   :  { %3039 = vmatmul.mubr.f32.vlgmr.msra.gmra.mxu0 %v3074_v19 }
 0xd5e   :  { %v2009_v25 = vpop.f32.mrf.mxu0 }
 0xd5f   :  { %v2010_v27 = vadd.f32 %v2020_v23, %v2009_v25 }
 0xd60   :  { %v3040_v29 = vpop.f32.mrf.mxu0 }
 0xd61   :  { %2013 = vst [vmem:[%s4333_s9] sm:$0xff] %v2010_v27 }

</bundles_post_ra>
